<compile_context>
chip_gen: v7x
topology: tpu7x:2x2x1
jax: 0.10.0
libtpu: 0.0.40
codegen_flags: <defaults>
</compile_context>

<pallas_src>
import functools

import jax
import jax.numpy as jnp
from jax import lax
from jax.experimental import pallas as pl
from jax.experimental.pallas import tpu as pltpu


def transformer_block_kernel(
    x_ref,
    ln1_s_ref, ln1_b_ref,
    wqkv_ref, wo_ref, bo_ref,
    ln2_s_ref, ln2_b_ref,
    w1_ref, b1_ref, w2_ref, b2_ref,
    o_ref,
    *, num_heads, matmul_dtype, mlp_chunk):
    eps = 1e-5
    xb = x_ref[...]                      # (Bb, T, C)
    bb, t, c = xb.shape
    hd = c // num_heads
    r = bb * t

    # Flatten (Bb, T) -> rows so every dense matmul sees M = Bb*T.
    x = xb.reshape(r, c)                 # leading-dim reshape only (layout-cheap)

    def mm_cast(v):
        if matmul_dtype is None or v.dtype == matmul_dtype:
            return v
        return v.astype(matmul_dtype)

    def matmul(a, b):
        return jnp.dot(mm_cast(a), mm_cast(b), preferred_element_type=jnp.float32)

    def layer_norm(v, scale, bias):
        mean = jnp.mean(v, axis=-1, keepdims=True)
        # torch.std default is unbiased (ddof = 1); denominator is (std + eps).
        var = jnp.sum((v - mean) ** 2, axis=-1, keepdims=True) * (1.0 / (c - 1))
        inv = pl.reciprocal(jnp.sqrt(var) + eps, approx=True)   # EUP slot
        return scale * ((v - mean) * inv) + bias

    # ----- attention branch -----
    xn = layer_norm(x, ln1_s_ref[...], ln1_b_ref[...])
    xn_c = mm_cast(xn)                   # cast once; reused by the fused QKV matmul

    # Fused QKV: one MXU pass with N = 3C instead of three passes with N = C.
    qkv = jnp.dot(xn_c, mm_cast(wqkv_ref[...]),
                  preferred_element_type=jnp.float32)           # (R, 3C) f32
    qkv3 = qkv.reshape(bb, t, 3 * c)

    inv_sqrt_hd = 1.0 / float(hd) ** 0.5

    # (Bb, T, 3C) -> (H*Bb, T, hd): per-head lane slices stacked along the
    # LEADING axis so heads become a dot_general batch dim (only leading-dim
    # reshapes / concats; no non-minor transposes).
    # TODO(synk): for hd not a multiple of 128 these are masked sub-vreg copies;
    # a two-batch-dim dot_general or 128-lane head groups would avoid them.
    def heads(base):
        return jnp.concatenate(
            [qkv3[:, :, base + h * hd: base + (h + 1) * hd]
             for h in range(num_heads)], axis=0)

    # Fold 1/sqrt(hd) into q: masked entries are written as -inf directly, so
    # mask-before-scale semantics are preserved exactly.
    qh = heads(0) * inv_sqrt_hd          # (H*Bb, T, hd)
    kh = heads(c)
    vh = heads(2 * c)

    row = lax.broadcasted_iota(jnp.int32, (t, t), 0)
    col = lax.broadcasted_iota(jnp.int32, (t, t), 1)
    causal = (col > row)[None]           # torch.triu(ones, diagonal=1).bool()

    # NOTE: the reference computes keys @ queries^T (not q @ k^T); keep it.
    s = jnp.einsum('gid,gjd->gij', mm_cast(kh), mm_cast(qh),
                   preferred_element_type=jnp.float32)          # (H*Bb, T, T)
    s = jnp.where(causal, -jnp.inf, s)
    m = jnp.max(s, axis=-1, keepdims=True)
    e = jnp.exp(s - m)
    # TODO(synk): if a bundle dump shows the single EUP saturating at large T,
    # compute this exp in bf16 (v6e/v7x only) or switch to a KV-chunked softmax.
    w = e * pl.reciprocal(jnp.sum(e, axis=-1, keepdims=True), approx=True)
    ctx = jnp.einsum('gij,gjd->gid', mm_cast(w), mm_cast(vh),
                     preferred_element_type=jnp.float32)        # (H*Bb, T, hd)

    # Back to (R, C) with heads head-major along lanes, matching torch's .view().
    ctx = jnp.concatenate(
        [ctx[h * bb:(h + 1) * bb].reshape(r, hd) for h in range(num_heads)],
        axis=-1)
    att = matmul(ctx, wo_ref[...]) + bo_ref[...]

    # TODO(synk): nn.Dropout(drop_rate) on attention / residual is identity in eval mode.
    x1 = x + att

    # ----- MLP branch (hidden dimension chunked; (R, 4C) never materialized) -----
    xn2 = layer_norm(x1, ln2_s_ref[...], ln2_b_ref[...])
    xn2_c = mm_cast(xn2)                 # cast once; reused by every chunk matmul
    h4 = w1_ref.shape[1]
    b1 = b1_ref[...]                     # (1, 4C), loaded once outside the loop
    acc = jnp.zeros((r, c), jnp.float32)
    for lo in range(0, h4, mlp_chunk):   # static unroll; per-chunk weight slice
        h1c = jnp.dot(xn2_c, mm_cast(w1_ref[:, lo:lo + mlp_chunk]),
                      preferred_element_type=jnp.float32) + b1[:, lo:lo + mlp_chunk]
        gc = 0.5 * h1c * (1.0 + jnp.tanh(0.7978845608 * (h1c + 0.044715 * h1c ** 3)))
        acc = acc + jnp.dot(mm_cast(gc), mm_cast(w2_ref[lo:lo + mlp_chunk, :]),
                            preferred_element_type=jnp.float32)
    ff = acc + b2_ref[...]

    o_ref[...] = (x1 + ff).reshape(bb, t, c).astype(o_ref.dtype)


# ------------------------- sizing heuristics -------------------------
def _vmem_capacity_bytes():
    """Per-TensorCore VMEM; falls back to the smallest generation (v7x, 64 MiB)."""
    try:
        info = pltpu.get_tpu_info()
        cap = int(getattr(info, "vmem_capacity_bytes", 0))
        if cap > 0:
            return cap
    except Exception:
        pass
    return 64 << 20


def _step_vmem_bytes(bb, seq, emb, hidden, num_heads, mlp_chunk, w_itemsize):
    """Rough per-grid-step working set (per TensorCore): single-buffered weights,
    double-buffered x/out tiles, f32 activations including the three
    (H*Bb, T, T) score tensors and the chunked MLP temporaries."""
    f32 = 4
    rows = bb * seq
    weights = (4 * emb * emb + 2 * emb * hidden) * w_itemsize \
              + (7 * emb + hidden) * f32
    io = 2 * 2 * rows * emb * f32                     # x + out tiles, double-buffered
    scores = 3 * num_heads * bb * seq * seq * f32     # s, e, softmax weights
    acts = rows * (15 * emb + 2 * mlp_chunk) * f32    # xn/qkv/heads/ctx/x1/... + chunk temps
    return weights + io + scores + acts


def _choose_block_b(batch, seq, emb, hidden, num_heads, mlp_chunk,
                    w_itemsize, vmem_budget):
    """Largest divisor of `batch` that (a) fits the T^2-aware per-step VMEM
    budget, (b) keeps >= 2 grid steps whenever possible so the 'parallel' axis
    can shard across v7x's two TensorCores, (c) targets ~512 rows per step to
    amortize the ~0.35us/step overhead and fill the MXU M dimension."""
    divisors = [d for d in range(1, batch + 1) if batch % d == 0]
    fitting = [d for d in divisors
               if _step_vmem_bytes(d, seq, emb, hidden, num_heads, mlp_chunk,
                                   w_itemsize) <= vmem_budget] or [1]
    pref = [d for d in fitting if batch // d >= 2] or fitting
    target = max(1, 512 // max(seq, 1))
    capped = [d for d in pref if d <= target] or [min(pref)]
    return max(capped)


# ------------------------- wrapper -------------------------
def transformer_block(x, params, num_heads, *, matmul_dtype=None, block_b=None,
                      mlp_chunk=None, single_buffer_weights=True):
    (ln1_s, ln1_b, wq, wk, wv, wo, bo, ln2_s, ln2_b, w1, b1, w2, b2) = params
    B, T, C = x.shape
    H4 = w1.shape[1]

    # Fused QKV weight: one (C, 3C) matmul instead of three (C, C) ones.
    wqkv = jnp.concatenate([wq, wk, wv], axis=1)

    # bf16 MXU operands: cast the big weights ON THE HOST so weight HBM->VMEM
    # DMA and VMEM residency are halved and no per-step weight cast is needed.
    # Biases / LN params stay f32 (they are applied in f32).
    # NOTE(v5e): no bf16 VPU/EUP there -> activation casts are real VALU work;
    # prefer matmul_dtype=None on v5e (weight-only bf16 can be done by the caller).
    if matmul_dtype is not None:
        wqkv = wqkv.astype(matmul_dtype)
        wo = wo.astype(matmul_dtype)
        w1 = w1.astype(matmul_dtype)
        w2 = w2.astype(matmul_dtype)
    w_itemsize = wqkv.dtype.itemsize

    if mlp_chunk is None:
        mlp_chunk = H4 if H4 <= 512 else 512
    if H4 % mlp_chunk:
        mlp_chunk = H4

    vmem_cap = _vmem_capacity_bytes()                 # per TensorCore
    if block_b is None:
        block_b = _choose_block_b(B, T, C, H4, num_heads, mlp_chunk,
                                  w_itemsize, int(vmem_cap * 0.85))
    assert B % block_b == 0

    est = _step_vmem_bytes(block_b, T, C, H4, num_heads, mlp_chunk, w_itemsize)
    # Scoped VMEM limit derived from the hardware query + margin (not a fixed cap).
    vmem_limit = int(min(max(est * 1.4, 32 << 20), vmem_cap - (2 << 20)))

    kernel = functools.partial(transformer_block_kernel, num_heads=num_heads,
                               matmul_dtype=matmul_dtype, mlp_chunk=mlp_chunk)
    args = (x, ln1_s, ln1_b, wqkv, wo, bo, ln2_s, ln2_b, w1, b1, w2, b2)

    def run(single_buffer):
        def wfull(shape):
            n = len(shape)
            kw = {}
            if single_buffer:
                # Grid-invariant tensors: do not double-buffer them in VMEM.
                kw["pipeline_mode"] = pl.Buffered(1)
            return pl.BlockSpec(shape, lambda b: (0,) * n, **kw)

        in_specs = [
            pl.BlockSpec((block_b, T, C), lambda b: (b, 0, 0)),    # x
            wfull(ln1_s.shape), wfull(ln1_b.shape),                # ln1 scale / bias
            wfull(wqkv.shape), wfull(wo.shape), wfull(bo.shape),   # wqkv, wo, bo
            wfull(ln2_s.shape), wfull(ln2_b.shape),                # ln2 scale / bias
            wfull(w1.shape), wfull(b1.shape),                      # w1, b1
            wfull(w2.shape), wfull(b2.shape),                      # w2, b2
        ]
        out_spec = pl.BlockSpec((block_b, T, C), lambda b: (b, 0, 0))

        return pl.pallas_call(
            kernel,
            out_shape=jax.ShapeDtypeStruct((B, T, C), x.dtype),
            grid=(B // block_b,),
            in_specs=in_specs,
            out_specs=out_spec,
            compiler_params=pltpu.CompilerParams(
                dimension_semantics=("parallel",),
                vmem_limit_bytes=vmem_limit),
        )(*args)

    if single_buffer_weights and hasattr(pl, "Buffered"):
        try:
            return run(True)
        except Exception:
            # jax build without BlockSpec(pipeline_mode=...) support for
            # pallas_call: fall back to default (double-buffered) weight specs.
            pass
    return run(False)


# ------------------------- pure-JAX reference -------------------------
def _layer_norm_ref(x, scale, bias, eps=1e-5):
    mean = x.mean(-1, keepdims=True)
    var = ((x - mean) ** 2).sum(-1, keepdims=True) / (x.shape[-1] - 1)
    std = jnp.sqrt(var)
    return scale * (x - mean) / (std + eps) + bias


def _attention_ref(x, wq, wk, wv, wo, bo, num_heads):
    b, t, c = x.shape
    hd = c // num_heads
    q = (x @ wq).reshape(b, t, num_heads, hd).transpose(0, 2, 1, 3)
    k = (x @ wk).reshape(b, t, num_heads, hd).transpose(0, 2, 1, 3)
    v = (x @ wv).reshape(b, t, num_heads, hd).transpose(0, 2, 1, 3)
    scores = k @ jnp.swapaxes(q, -2, -1)
    mask = jnp.triu(jnp.ones((t, t), bool), k=1)
    scores = jnp.where(mask, -jnp.inf, scores) / (hd ** 0.5)
    w = jax.nn.softmax(scores, axis=-1)
    ctx = (w @ v).transpose(0, 2, 1, 3).reshape(b, t, c)
    return ctx @ wo + bo


def _transformer_ref(x, params, num_heads):
    (ln1_s, ln1_b, wq, wk, wv, wo, bo, ln2_s, ln2_b, w1, b1, w2, b2) = params
    x = x + _attention_ref(_layer_norm_ref(x, ln1_s, ln1_b), wq, wk, wv, wo, bo, num_heads)
    h = _layer_norm_ref(x, ln2_s, ln2_b) @ w1 + b1
    g = 0.5 * h * (1.0 + jnp.tanh(0.7978845608 * (h + 0.044715 * h ** 3)))
    return x + g @ w2 + b2


if __name__ == "__main__":
    # cfg: emb_dim=32, context_length=8, n_heads=4, drop_rate=0.0, qkv_bias=False
    B, T, C, H = 2, 8, 32, 4
    H4 = 4 * C
    key = jax.random.PRNGKey(0)
    kx, kq, kk, kv, ko, kbo, k1, kb1, k2, kb2 = jax.random.split(key, 10)

    x = jax.random.normal(kx, (B, T, C), jnp.float32)

    params = (
        jnp.ones((1, C), jnp.float32),                              # ln1 scale
        jnp.zeros((1, C), jnp.float32),                             # ln1 bias
        0.02 * jax.random.normal(kq, (C, C), jnp.float32),          # wq (in, out)
        0.02 * jax.random.normal(kk, (C, C), jnp.float32),          # wk
        0.02 * jax.random.normal(kv, (C, C), jnp.float32),          # wv
        0.02 * jax.random.normal(ko, (C, C), jnp.float32),          # wo
        0.02 * jax.random.normal(kbo, (1, C), jnp.float32),         # bo
        jnp.ones((1, C), jnp.float32),                              # ln2 scale
        jnp.zeros((1, C), jnp.float32),                             # ln2 bias
        0.02 * jax.random.normal(k1, (C, H4), jnp.float32),         # w1
        0.02 * jax.random.normal(kb1, (1, H4), jnp.float32),        # b1
        0.02 * jax.random.normal(k2, (H4, C), jnp.float32),         # w2
        0.02 * jax.random.normal(kb2, (1, C), jnp.float32),         # b2
    )

    ref = _transformer_ref(x, params, num_heads=H)

    # f32 MXU path (default): tight check (only approx-reciprocal / op-reorder deltas).
    out = transformer_block(x, params, num_heads=H)
    out = jax.block_until_ready(out)
    assert out.shape == (B, T, C) and out.dtype == jnp.float32
    assert jnp.allclose(out, ref, rtol=2e-3, atol=2e-3), "f32 path mismatch vs reference"

    # bf16-operand MXU path (v6e/v7x throughput option): host-cast bf16 weights,
    # f32 accumulate, looser check.
    out_bf16 = transformer_block(x, params, num_heads=H, matmul_dtype=jnp.bfloat16)
    out_bf16 = jax.block_until_ready(out_bf16)
    assert jnp.allclose(out_bf16, ref, rtol=2e-2, atol=2e-2), "bf16 path mismatch vs reference"

    print("KERNEL_OK")
</pallas_src>

<mosaic_0001>
module attributes {stable_mosaic.version = 11 : i64} {
  func.func @transformer_block_kernel(%arg0: i32, %arg1: memref<1x8x32xf32, #tpu.memory_space<vmem>>, %arg2: memref<1x32xf32, #tpu.memory_space<vmem>>, %arg3: memref<1x32xf32, #tpu.memory_space<vmem>>, %arg4: memref<32x96xf32, #tpu.memory_space<vmem>>, %arg5: memref<32x32xf32, #tpu.memory_space<vmem>>, %arg6: memref<1x32xf32, #tpu.memory_space<vmem>>, %arg7: memref<1x32xf32, #tpu.memory_space<vmem>>, %arg8: memref<1x32xf32, #tpu.memory_space<vmem>>, %arg9: memref<32x128xf32, #tpu.memory_space<vmem>>, %arg10: memref<1x128xf32, #tpu.memory_space<vmem>>, %arg11: memref<128x32xf32, #tpu.memory_space<vmem>>, %arg12: memref<1x32xf32, #tpu.memory_space<vmem>>, %arg13: memref<1x8x32xf32, #tpu.memory_space<vmem>>) attributes {dimension_semantics = [#tpu.dimension_semantics<parallel>], iteration_bounds = array<i64: 2>, scalar_prefetch = 0 : i64, scratch_operands = 0 : i64, tpu.core_type = #tpu.core_type<tc>, window_params = [{transform_indices = @transform_0, window_bounds = array<i64: 1, 8, 32>}, {pipeline_mode = #tpu.pipeline_mode<synchronous>, transform_indices = @transform_1, window_bounds = array<i64: 1, 32>}, {pipeline_mode = #tpu.pipeline_mode<synchronous>, transform_indices = @transform_2, window_bounds = array<i64: 1, 32>}, {pipeline_mode = #tpu.pipeline_mode<synchronous>, transform_indices = @transform_3, window_bounds = array<i64: 32, 96>}, {pipeline_mode = #tpu.pipeline_mode<synchronous>, transform_indices = @transform_4, window_bounds = array<i64: 32, 32>}, {pipeline_mode = #tpu.pipeline_mode<synchronous>, transform_indices = @transform_5, window_bounds = array<i64: 1, 32>}, {pipeline_mode = #tpu.pipeline_mode<synchronous>, transform_indices = @transform_6, window_bounds = array<i64: 1, 32>}, {pipeline_mode = #tpu.pipeline_mode<synchronous>, transform_indices = @transform_7, window_bounds = array<i64: 1, 32>}, {pipeline_mode = #tpu.pipeline_mode<synchronous>, transform_indices = @transform_8, window_bounds = array<i64: 32, 128>}, {pipeline_mode = #tpu.pipeline_mode<synchronous>, transform_indices = @transform_9, window_bounds = array<i64: 1, 128>}, {pipeline_mode = #tpu.pipeline_mode<synchronous>, transform_indices = @transform_10, window_bounds = array<i64: 128, 32>}, {pipeline_mode = #tpu.pipeline_mode<synchronous>, transform_indices = @transform_11, window_bounds = array<i64: 1, 32>}, {transform_indices = @transform_12, window_bounds = array<i64: 1, 8, 32>}]} {
    %c0 = arith.constant 0 : index
    %c0_0 = arith.constant 0 : index
    %c0_1 = arith.constant 0 : index
    %0 = vector.load %arg1[%c0, %c0_0, %c0_1] : memref<1x8x32xf32, #tpu.memory_space<vmem>>, vector<1x8x32xf32>
    %1 = vector.shape_cast %0 : vector<1x8x32xf32> to vector<8x32xf32>
    %c0_2 = arith.constant 0 : index
    %c0_3 = arith.constant 0 : index
    %2 = vector.load %arg2[%c0_2, %c0_3] : memref<1x32xf32, #tpu.memory_space<vmem>>, vector<1x32xf32>
    %c0_4 = arith.constant 0 : index
    %c0_5 = arith.constant 0 : index
    %3 = vector.load %arg3[%c0_4, %c0_5] : memref<1x32xf32, #tpu.memory_space<vmem>>, vector<1x32xf32>
    %cst = arith.constant dense<0.000000e+00> : vector<8xf32>
    %4 = vector.multi_reduction <add>, %1, %cst [1] : vector<8x32xf32> to vector<8xf32>
    %5 = vector.shape_cast %4 : vector<8xf32> to vector<8x1xf32>
    %cst_6 = arith.constant 3.200000e+01 : f32
    %6 = vector.broadcast %cst_6 : f32 to vector<8x1xf32>
    %7 = arith.divf %5, %6 : vector<8x1xf32>
    %8 = vector.broadcast %7 : vector<8x1xf32> to vector<8x32xf32>
    %9 = arith.subf %1, %8 : vector<8x32xf32>
    %10 = arith.mulf %9, %9 : vector<8x32xf32>
    %cst_7 = arith.constant dense<0.000000e+00> : vector<8xf32>
    %11 = vector.multi_reduction <add>, %10, %cst_7 [1] : vector<8x32xf32> to vector<8xf32>
    %12 = vector.shape_cast %11 : vector<8xf32> to vector<8x1xf32>
    %cst_8 = arith.constant 0.0322580636 : f32
    %13 = vector.broadcast %cst_8 : f32 to vector<8x1xf32>
    %14 = arith.mulf %12, %13 : vector<8x1xf32>
    %15 = math.sqrt %14 : vector<8x1xf32>
    %cst_9 = arith.constant 9.99999974E-6 : f32
    %16 = vector.broadcast %cst_9 : f32 to vector<8x1xf32>
    %17 = arith.addf %15, %16 : vector<8x1xf32>
    %18 = tpu.reciprocal %17 {approx = true} : vector<8x1xf32> -> vector<8x1xf32>
    %19 = vector.broadcast %7 : vector<8x1xf32> to vector<8x32xf32>
    %20 = arith.subf %1, %19 : vector<8x32xf32>
    %21 = vector.broadcast %18 : vector<8x1xf32> to vector<8x32xf32>
    %22 = arith.mulf %20, %21 : vector<8x32xf32>
    %23 = vector.broadcast %2 : vector<1x32xf32> to vector<8x32xf32>
    %24 = arith.mulf %23, %22 : vector<8x32xf32>
    %25 = vector.broadcast %3 : vector<1x32xf32> to vector<8x32xf32>
    %26 = arith.addf %24, %25 : vector<8x32xf32>
    %c0_10 = arith.constant 0 : index
    %c0_11 = arith.constant 0 : index
    %27 = vector.load %arg4[%c0_10, %c0_11] : memref<32x96xf32, #tpu.memory_space<vmem>>, vector<32x96xf32>
    %cst_12 = arith.constant dense<0.000000e+00> : vector<8x96xf32>
    %28 = tpu.matmul %26, %27, %cst_12 {dimension_numbers = #tpu.dot_dimension_numbers<[1], [0], [0], [1], [0, 0, 1, 1], [], []>} : vector<8x32xf32>, vector<32x96xf32>, vector<8x96xf32> -> vector<8x96xf32>
    %29 = vector.shape_cast %28 : vector<8x96xf32> to vector<1x8x96xf32>
    %30 = vector.extract_strided_slice %29 {offsets = [0, 0, 0], sizes = [1, 8, 8], strides = [1, 1, 1]} : vector<1x8x96xf32> to vector<1x8x8xf32>
    %31 = vector.extract_strided_slice %29 {offsets = [0, 0, 8], sizes = [1, 8, 8], strides = [1, 1, 1]} : vector<1x8x96xf32> to vector<1x8x8xf32>
    %32 = vector.extract_strided_slice %29 {offsets = [0, 0, 16], sizes = [1, 8, 8], strides = [1, 1, 1]} : vector<1x8x96xf32> to vector<1x8x8xf32>
    %33 = vector.extract_strided_slice %29 {offsets = [0, 0, 24], sizes = [1, 8, 8], strides = [1, 1, 1]} : vector<1x8x96xf32> to vector<1x8x8xf32>
    %34 = tpu.concatenate %30, %31, %32, %33 in 0 : vector<1x8x8xf32>, vector<1x8x8xf32>, vector<1x8x8xf32>, vector<1x8x8xf32> -> vector<4x8x8xf32>
    %cst_13 = arith.constant 0.353553385 : f32
    %35 = vector.broadcast %cst_13 : f32 to vector<4x8x8xf32>
    %36 = arith.mulf %34, %35 : vector<4x8x8xf32>
    %37 = vector.extract_strided_slice %29 {offsets = [0, 0, 32], sizes = [1, 8, 8], strides = [1, 1, 1]} : vector<1x8x96xf32> to vector<1x8x8xf32>
    %38 = vector.extract_strided_slice %29 {offsets = [0, 0, 40], sizes = [1, 8, 8], strides = [1, 1, 1]} : vector<1x8x96xf32> to vector<1x8x8xf32>
    %39 = vector.extract_strided_slice %29 {offsets = [0, 0, 48], sizes = [1, 8, 8], strides = [1, 1, 1]} : vector<1x8x96xf32> to vector<1x8x8xf32>
    %40 = vector.extract_strided_slice %29 {offsets = [0, 0, 56], sizes = [1, 8, 8], strides = [1, 1, 1]} : vector<1x8x96xf32> to vector<1x8x8xf32>
    %41 = tpu.concatenate %37, %38, %39, %40 in 0 : vector<1x8x8xf32>, vector<1x8x8xf32>, vector<1x8x8xf32>, vector<1x8x8xf32> -> vector<4x8x8xf32>
    %42 = vector.extract_strided_slice %29 {offsets = [0, 0, 64], sizes = [1, 8, 8], strides = [1, 1, 1]} : vector<1x8x96xf32> to vector<1x8x8xf32>
    %43 = vector.extract_strided_slice %29 {offsets = [0, 0, 72], sizes = [1, 8, 8], strides = [1, 1, 1]} : vector<1x8x96xf32> to vector<1x8x8xf32>
    %44 = vector.extract_strided_slice %29 {offsets = [0, 0, 80], sizes = [1, 8, 8], strides = [1, 1, 1]} : vector<1x8x96xf32> to vector<1x8x8xf32>
    %45 = vector.extract_strided_slice %29 {offsets = [0, 0, 88], sizes = [1, 8, 8], strides = [1, 1, 1]} : vector<1x8x96xf32> to vector<1x8x8xf32>
    %46 = tpu.concatenate %42, %43, %44, %45 in 0 : vector<1x8x8xf32>, vector<1x8x8xf32>, vector<1x8x8xf32>, vector<1x8x8xf32> -> vector<4x8x8xf32>
    %47 = tpu.iota {dimensions = array<i32: 0>} : vector<8x8xi32>
    %48 = tpu.iota {dimensions = array<i32: 1>} : vector<8x8xi32>
    %49 = arith.cmpi sgt, %48, %47 : vector<8x8xi32>
    %50 = vector.shape_cast %49 : vector<8x8xi1> to vector<1x8x8xi1>
    "tpu.trace_start"() <{level = 10 : i32, message = "gid,gjd->gij"}> : () -> ()
    %cst_14 = arith.constant dense<0.000000e+00> : vector<4x8x8xf32>
    %51 = tpu.matmul %41, %36, %cst_14 {dimension_numbers = #tpu.dot_dimension_numbers<[2], [2], [1], [1], [0, 0, 0, 1, 1, 1], [0], [0]>} : vector<4x8x8xf32>, vector<4x8x8xf32>, vector<4x8x8xf32> -> vector<4x8x8xf32>
    %cst_15 = arith.constant 0xFF800000 : f32
    "tpu.trace_stop"() : () -> ()
    %52 = vector.shape_cast %50 : vector<1x8x8xi1> to vector<1x8x8xi1>
    %53 = vector.broadcast %52 : vector<1x8x8xi1> to vector<4x8x8xi1>
    %54 = vector.broadcast %cst_15 : f32 to vector<4x8x8xf32>
    %55 = arith.select %53, %54, %51 : vector<4x8x8xi1>, vector<4x8x8xf32>
    %cst_16 = arith.constant dense<0xFF800000> : vector<4x8xf32>
    %56 = vector.multi_reduction <maximumf>, %55, %cst_16 [2] : vector<4x8x8xf32> to vector<4x8xf32>
    %57 = vector.shape_cast %56 : vector<4x8xf32> to vector<4x8x1xf32>
    %58 = vector.broadcast %57 : vector<4x8x1xf32> to vector<4x8x8xf32>
    %59 = arith.subf %55, %58 : vector<4x8x8xf32>
    %60 = math.exp %59 : vector<4x8x8xf32>
    %cst_17 = arith.constant dense<0.000000e+00> : vector<4x8xf32>
    %61 = vector.multi_reduction <add>, %60, %cst_17 [2] : vector<4x8x8xf32> to vector<4x8xf32>
    %62 = vector.shape_cast %61 : vector<4x8xf32> to vector<4x8x1xf32>
    %63 = tpu.reciprocal %62 {approx = true} : vector<4x8x1xf32> -> vector<4x8x1xf32>
    %64 = vector.broadcast %63 : vector<4x8x1xf32> to vector<4x8x8xf32>
    %65 = arith.mulf %60, %64 : vector<4x8x8xf32>
    "tpu.trace_start"() <{level = 10 : i32, message = "gij,gjd->gid"}> : () -> ()
    %cst_18 = arith.constant dense<0.000000e+00> : vector<4x8x8xf32>
    %66 = tpu.matmul %65, %46, %cst_18 {dimension_numbers = #tpu.dot_dimension_numbers<[2], [1], [1], [2], [0, 0, 0, 1, 1, 2], [0], [0]>} : vector<4x8x8xf32>, vector<4x8x8xf32>, vector<4x8x8xf32> -> vector<4x8x8xf32>
    "tpu.trace_stop"() : () -> ()
    %67 = vector.extract_strided_slice %66 {offsets = [0, 0, 0], sizes = [1, 8, 8], strides = [1, 1, 1]} : vector<4x8x8xf32> to vector<1x8x8xf32>
    %68 = vector.shape_cast %67 : vector<1x8x8xf32> to vector<8x8xf32>
    %69 = vector.extract_strided_slice %66 {offsets = [1, 0, 0], sizes = [1, 8, 8], strides = [1, 1, 1]} : vector<4x8x8xf32> to vector<1x8x8xf32>
    %70 = vector.shape_cast %69 : vector<1x8x8xf32> to vector<8x8xf32>
    %71 = vector.extract_strided_slice %66 {offsets = [2, 0, 0], sizes = [1, 8, 8], strides = [1, 1, 1]} : vector<4x8x8xf32> to vector<1x8x8xf32>
    %72 = vector.shape_cast %71 : vector<1x8x8xf32> to vector<8x8xf32>
    %73 = vector.extract_strided_slice %66 {offsets = [3, 0, 0], sizes = [1, 8, 8], strides = [1, 1, 1]} : vector<4x8x8xf32> to vector<1x8x8xf32>
    %74 = vector.shape_cast %73 : vector<1x8x8xf32> to vector<8x8xf32>
    %75 = tpu.concatenate %68, %70, %72, %74 in 1 : vector<8x8xf32>, vector<8x8xf32>, vector<8x8xf32>, vector<8x8xf32> -> vector<8x32xf32>
    %c0_19 = arith.constant 0 : index
    %c0_20 = arith.constant 0 : index
    %76 = vector.load %arg5[%c0_19, %c0_20] : memref<32x32xf32, #tpu.memory_space<vmem>>, vector<32x32xf32>
    %cst_21 = arith.constant dense<0.000000e+00> : vector<8x32xf32>
    %77 = tpu.matmul %75, %76, %cst_21 {dimension_numbers = #tpu.dot_dimension_numbers<[1], [0], [0], [1], [0, 0, 1, 1], [], []>} : vector<8x32xf32>, vector<32x32xf32>, vector<8x32xf32> -> vector<8x32xf32>
    %c0_22 = arith.constant 0 : index
    %c0_23 = arith.constant 0 : index
    %78 = vector.load %arg6[%c0_22, %c0_23] : memref<1x32xf32, #tpu.memory_space<vmem>>, vector<1x32xf32>
    %79 = vector.broadcast %78 : vector<1x32xf32> to vector<8x32xf32>
    %80 = arith.addf %77, %79 : vector<8x32xf32>
    %81 = arith.addf %1, %80 : vector<8x32xf32>
    %c0_24 = arith.constant 0 : index
    %c0_25 = arith.constant 0 : index
    %82 = vector.load %arg7[%c0_24, %c0_25] : memref<1x32xf32, #tpu.memory_space<vmem>>, vector<1x32xf32>
    %c0_26 = arith.constant 0 : index
    %c0_27 = arith.constant 0 : index
    %83 = vector.load %arg8[%c0_26, %c0_27] : memref<1x32xf32, #tpu.memory_space<vmem>>, vector<1x32xf32>
    %cst_28 = arith.constant dense<0.000000e+00> : vector<8xf32>
    %84 = vector.multi_reduction <add>, %81, %cst_28 [1] : vector<8x32xf32> to vector<8xf32>
    %85 = vector.shape_cast %84 : vector<8xf32> to vector<8x1xf32>
    %cst_29 = arith.constant 3.200000e+01 : f32
    %86 = vector.broadcast %cst_29 : f32 to vector<8x1xf32>
    %87 = arith.divf %85, %86 : vector<8x1xf32>
    %88 = vector.broadcast %87 : vector<8x1xf32> to vector<8x32xf32>
    %89 = arith.subf %81, %88 : vector<8x32xf32>
    %90 = arith.mulf %89, %89 : vector<8x32xf32>
    %cst_30 = arith.constant dense<0.000000e+00> : vector<8xf32>
    %91 = vector.multi_reduction <add>, %90, %cst_30 [1] : vector<8x32xf32> to vector<8xf32>
    %92 = vector.shape_cast %91 : vector<8xf32> to vector<8x1xf32>
    %cst_31 = arith.constant 0.0322580636 : f32
    %93 = vector.broadcast %cst_31 : f32 to vector<8x1xf32>
    %94 = arith.mulf %92, %93 : vector<8x1xf32>
    %95 = math.sqrt %94 : vector<8x1xf32>
    %cst_32 = arith.constant 9.99999974E-6 : f32
    %96 = vector.broadcast %cst_32 : f32 to vector<8x1xf32>
    %97 = arith.addf %95, %96 : vector<8x1xf32>
    %98 = tpu.reciprocal %97 {approx = true} : vector<8x1xf32> -> vector<8x1xf32>
    %99 = vector.broadcast %87 : vector<8x1xf32> to vector<8x32xf32>
    %100 = arith.subf %81, %99 : vector<8x32xf32>
    %101 = vector.broadcast %98 : vector<8x1xf32> to vector<8x32xf32>
    %102 = arith.mulf %100, %101 : vector<8x32xf32>
    %103 = vector.broadcast %82 : vector<1x32xf32> to vector<8x32xf32>
    %104 = arith.mulf %103, %102 : vector<8x32xf32>
    %105 = vector.broadcast %83 : vector<1x32xf32> to vector<8x32xf32>
    %106 = arith.addf %104, %105 : vector<8x32xf32>
    %c0_33 = arith.constant 0 : index
    %c0_34 = arith.constant 0 : index
    %107 = vector.load %arg10[%c0_33, %c0_34] : memref<1x128xf32, #tpu.memory_space<vmem>>, vector<1x128xf32>
    %cst_35 = arith.constant 0.000000e+00 : f32
    %108 = vector.broadcast %cst_35 : f32 to vector<8x32xf32>
    %c0_36 = arith.constant 0 : index
    %c0_37 = arith.constant 0 : index
    %109 = vector.load %arg9[%c0_36, %c0_37] : memref<32x128xf32, #tpu.memory_space<vmem>>, vector<32x128xf32>
    %cst_38 = arith.constant dense<0.000000e+00> : vector<8x128xf32>
    %110 = tpu.matmul %106, %109, %cst_38 {dimension_numbers = #tpu.dot_dimension_numbers<[1], [0], [0], [1], [0, 0, 1, 1], [], []>} : vector<8x32xf32>, vector<32x128xf32>, vector<8x128xf32> -> vector<8x128xf32>
    %111 = vector.broadcast %107 : vector<1x128xf32> to vector<8x128xf32>
    %112 = arith.addf %110, %111 : vector<8x128xf32>
    %cst_39 = arith.constant 5.000000e-01 : f32
    %113 = vector.broadcast %cst_39 : f32 to vector<8x128xf32>
    %114 = arith.mulf %113, %112 : vector<8x128xf32>
    %115 = arith.mulf %112, %112 : vector<8x128xf32>
    %116 = arith.mulf %112, %115 : vector<8x128xf32>
    %cst_40 = arith.constant 4.471500e-02 : f32
    %117 = vector.broadcast %cst_40 : f32 to vector<8x128xf32>
    %118 = arith.mulf %117, %116 : vector<8x128xf32>
    %119 = arith.addf %112, %118 : vector<8x128xf32>
    %cst_41 = arith.constant 0.797884583 : f32
    %120 = vector.broadcast %cst_41 : f32 to vector<8x128xf32>
    %121 = arith.mulf %120, %119 : vector<8x128xf32>
    %122 = math.tanh %121 : vector<8x128xf32>
    %cst_42 = arith.constant 1.000000e+00 : f32
    %123 = vector.broadcast %cst_42 : f32 to vector<8x128xf32>
    %124 = arith.addf %123, %122 : vector<8x128xf32>
    %125 = arith.mulf %114, %124 : vector<8x128xf32>
    %c0_43 = arith.constant 0 : index
    %c0_44 = arith.constant 0 : index
    %126 = vector.load %arg11[%c0_43, %c0_44] : memref<128x32xf32, #tpu.memory_space<vmem>>, vector<128x32xf32>
    %cst_45 = arith.constant dense<0.000000e+00> : vector<8x32xf32>
    %127 = tpu.matmul %125, %126, %cst_45 {dimension_numbers = #tpu.dot_dimension_numbers<[1], [0], [0], [1], [0, 0, 1, 1], [], []>} : vector<8x128xf32>, vector<128x32xf32>, vector<8x32xf32> -> vector<8x32xf32>
    %128 = arith.addf %108, %127 : vector<8x32xf32>
    %c0_46 = arith.constant 0 : index
    %c0_47 = arith.constant 0 : index
    %129 = vector.load %arg12[%c0_46, %c0_47] : memref<1x32xf32, #tpu.memory_space<vmem>>, vector<1x32xf32>
    %130 = vector.broadcast %129 : vector<1x32xf32> to vector<8x32xf32>
    %131 = arith.addf %128, %130 : vector<8x32xf32>
    %132 = arith.addf %81, %131 : vector<8x32xf32>
    %133 = vector.shape_cast %132 : vector<8x32xf32> to vector<1x8x32xf32>
    %c0_48 = arith.constant 0 : index
    %c0_49 = arith.constant 0 : index
    %c0_50 = arith.constant 0 : index
    %134 = vector.load %arg13[%c0_48, %c0_49, %c0_50] : memref<1x8x32xf32, #tpu.memory_space<vmem>>, vector<1x8x32xf32>
    tpu.vector_store %arg13[%c0_48, %c0_49, %c0_50], %133 {strides = array<i32>} : memref<1x8x32xf32, #tpu.memory_space<vmem>>, vector<1x8x32xf32>,
    return
  }
  func.func @transform_0(%arg0: i32) -> (i32, i32, i32) {
    %c0_i32 = arith.constant 0 : i32
    %c0_i32_0 = arith.constant 0 : i32
    %c0_i32_1 = arith.constant 0 : i32
    return %arg0, %c0_i32, %c0_i32_0 : i32, i32, i32
  }
  func.func @transform_1(%arg0: i32) -> (i32, i32) {
    %c0_i32 = arith.constant 0 : i32
    %c0_i32_0 = arith.constant 0 : i32
    %c0_i32_1 = arith.constant 0 : i32
    return %c0_i32, %c0_i32_0 : i32, i32
  }
  func.func @transform_2(%arg0: i32) -> (i32, i32) {
    %c0_i32 = arith.constant 0 : i32
    %c0_i32_0 = arith.constant 0 : i32
    %c0_i32_1 = arith.constant 0 : i32
    return %c0_i32, %c0_i32_0 : i32, i32
  }
  func.func @transform_3(%arg0: i32) -> (i32, i32) {
    %c0_i32 = arith.constant 0 : i32
    %c0_i32_0 = arith.constant 0 : i32
    %c0_i32_1 = arith.constant 0 : i32
    return %c0_i32, %c0_i32_0 : i32, i32
  }
  func.func @transform_4(%arg0: i32) -> (i32, i32) {
    %c0_i32 = arith.constant 0 : i32
    %c0_i32_0 = arith.constant 0 : i32
    %c0_i32_1 = arith.constant 0 : i32
    return %c0_i32, %c0_i32_0 : i32, i32
  }
  func.func @transform_5(%arg0: i32) -> (i32, i32) {
    %c0_i32 = arith.constant 0 : i32
    %c0_i32_0 = arith.constant 0 : i32
    %c0_i32_1 = arith.constant 0 : i32
    return %c0_i32, %c0_i32_0 : i32, i32
  }
  func.func @transform_6(%arg0: i32) -> (i32, i32) {
    %c0_i32 = arith.constant 0 : i32
    %c0_i32_0 = arith.constant 0 : i32
    %c0_i32_1 = arith.constant 0 : i32
    return %c0_i32, %c0_i32_0 : i32, i32
  }
  func.func @transform_7(%arg0: i32) -> (i32, i32) {
    %c0_i32 = arith.constant 0 : i32
    %c0_i32_0 = arith.constant 0 : i32
    %c0_i32_1 = arith.constant 0 : i32
    return %c0_i32, %c0_i32_0 : i32, i32
  }
  func.func @transform_8(%arg0: i32) -> (i32, i32) {
    %c0_i32 = arith.constant 0 : i32
    %c0_i32_0 = arith.constant 0 : i32
    %c0_i32_1 = arith.constant 0 : i32
    return %c0_i32, %c0_i32_0 : i32, i32
  }
  func.func @transform_9(%arg0: i32) -> (i32, i32) {
    %c0_i32 = arith.constant 0 : i32
    %c0_i32_0 = arith.constant 0 : i32
    %c0_i32_1 = arith.constant 0 : i32
    return %c0_i32, %c0_i32_0 : i32, i32
  }
  func.func @transform_10(%arg0: i32) -> (i32, i32) {
    %c0_i32 = arith.constant 0 : i32
    %c0_i32_0 = arith.constant 0 : i32
    %c0_i32_1 = arith.constant 0 : i32
    return %c0_i32, %c0_i32_0 : i32, i32
  }
  func.func @transform_11(%arg0: i32) -> (i32, i32) {
    %c0_i32 = arith.constant 0 : i32
    %c0_i32_0 = arith.constant 0 : i32
    %c0_i32_1 = arith.constant 0 : i32
    return %c0_i32, %c0_i32_0 : i32, i32
  }
  func.func @transform_12(%arg0: i32) -> (i32, i32, i32) {
    %c0_i32 = arith.constant 0 : i32
    %c0_i32_0 = arith.constant 0 : i32
    %c0_i32_1 = arith.constant 0 : i32
    return %arg0, %c0_i32, %c0_i32_0 : i32, i32, i32
  }
}

module attributes {stable_mosaic.version = 11 : i64} {
  func.func @transformer_block_kernel(%arg0: i32, %arg1: memref<1x8x32xf32, #tpu.memory_space<vmem>>, %arg2: memref<1x32xf32, #tpu.memory_space<vmem>>, %arg3: memref<1x32xf32, #tpu.memory_space<vmem>>, %arg4: memref<32x96xf32, #tpu.memory_space<vmem>>, %arg5: memref<32x32xf32, #tpu.memory_space<vmem>>, %arg6: memref<1x32xf32, #tpu.memory_space<vmem>>, %arg7: memref<1x32xf32, #tpu.memory_space<vmem>>, %arg8: memref<1x32xf32, #tpu.memory_space<vmem>>, %arg9: memref<32x128xf32, #tpu.memory_space<vmem>>, %arg10: memref<1x128xf32, #tpu.memory_space<vmem>>, %arg11: memref<128x32xf32, #tpu.memory_space<vmem>>, %arg12: memref<1x32xf32, #tpu.memory_space<vmem>>, %arg13: memref<1x8x32xf32, #tpu.memory_space<vmem>>) attributes {dimension_semantics = [#tpu.dimension_semantics<parallel>], iteration_bounds = array<i64: 2>, scalar_prefetch = 0 : i64, scratch_operands = 0 : i64, tpu.core_type = #tpu.core_type<tc>, window_params = [{transform_indices = @transform_0, window_bounds = array<i64: 1, 8, 32>}, {pipeline_mode = #tpu.pipeline_mode<synchronous>, transform_indices = @transform_1, window_bounds = array<i64: 1, 32>}, {pipeline_mode = #tpu.pipeline_mode<synchronous>, transform_indices = @transform_2, window_bounds = array<i64: 1, 32>}, {pipeline_mode = #tpu.pipeline_mode<synchronous>, transform_indices = @transform_3, window_bounds = array<i64: 32, 96>}, {pipeline_mode = #tpu.pipeline_mode<synchronous>, transform_indices = @transform_4, window_bounds = array<i64: 32, 32>}, {pipeline_mode = #tpu.pipeline_mode<synchronous>, transform_indices = @transform_5, window_bounds = array<i64: 1, 32>}, {pipeline_mode = #tpu.pipeline_mode<synchronous>, transform_indices = @transform_6, window_bounds = array<i64: 1, 32>}, {pipeline_mode = #tpu.pipeline_mode<synchronous>, transform_indices = @transform_7, window_bounds = array<i64: 1, 32>}, {pipeline_mode = #tpu.pipeline_mode<synchronous>, transform_indices = @transform_8, window_bounds = array<i64: 32, 128>}, {pipeline_mode = #tpu.pipeline_mode<synchronous>, transform_indices = @transform_9, window_bounds = array<i64: 1, 128>}, {pipeline_mode = #tpu.pipeline_mode<synchronous>, transform_indices = @transform_10, window_bounds = array<i64: 128, 32>}, {pipeline_mode = #tpu.pipeline_mode<synchronous>, transform_indices = @transform_11, window_bounds = array<i64: 1, 32>}, {transform_indices = @transform_12, window_bounds = array<i64: 1, 8, 32>}]} {
    %c0 = arith.constant 0 : index
    %c0_0 = arith.constant 0 : index
    %c0_1 = arith.constant 0 : index
    %0 = vector.load %arg1[%c0, %c0_0, %c0_1] : memref<1x8x32xf32, #tpu.memory_space<vmem>>, vector<1x8x32xf32>
    %1 = vector.shape_cast %0 : vector<1x8x32xf32> to vector<8x32xf32>
    %c0_2 = arith.constant 0 : index
    %c0_3 = arith.constant 0 : index
    %2 = vector.load %arg2[%c0_2, %c0_3] : memref<1x32xf32, #tpu.memory_space<vmem>>, vector<1x32xf32>
    %c0_4 = arith.constant 0 : index
    %c0_5 = arith.constant 0 : index
    %3 = vector.load %arg3[%c0_4, %c0_5] : memref<1x32xf32, #tpu.memory_space<vmem>>, vector<1x32xf32>
    %cst = arith.constant dense<0.000000e+00> : vector<8xf32>
    %4 = vector.multi_reduction <add>, %1, %cst [1] : vector<8x32xf32> to vector<8xf32>
    %5 = vector.shape_cast %4 : vector<8xf32> to vector<8x1xf32>
    %cst_6 = arith.constant 3.200000e+01 : f32
    %6 = vector.broadcast %cst_6 : f32 to vector<8x1xf32>
    %7 = arith.divf %5, %6 : vector<8x1xf32>
    %8 = vector.broadcast %7 : vector<8x1xf32> to vector<8x32xf32>
    %9 = arith.subf %1, %8 : vector<8x32xf32>
    %10 = arith.mulf %9, %9 : vector<8x32xf32>
    %cst_7 = arith.constant dense<0.000000e+00> : vector<8xf32>
    %11 = vector.multi_reduction <add>, %10, %cst_7 [1] : vector<8x32xf32> to vector<8xf32>
    %12 = vector.shape_cast %11 : vector<8xf32> to vector<8x1xf32>
    %cst_8 = arith.constant 0.0322580636 : f32
    %13 = vector.broadcast %cst_8 : f32 to vector<8x1xf32>
    %14 = arith.mulf %12, %13 : vector<8x1xf32>
    %15 = math.sqrt %14 : vector<8x1xf32>
    %cst_9 = arith.constant 9.99999974E-6 : f32
    %16 = vector.broadcast %cst_9 : f32 to vector<8x1xf32>
    %17 = arith.addf %15, %16 : vector<8x1xf32>
    %18 = tpu.reciprocal %17 {approx = true} : vector<8x1xf32> -> vector<8x1xf32>
    %19 = vector.broadcast %7 : vector<8x1xf32> to vector<8x32xf32>
    %20 = arith.subf %1, %19 : vector<8x32xf32>
    %21 = vector.broadcast %18 : vector<8x1xf32> to vector<8x32xf32>
    %22 = arith.mulf %20, %21 : vector<8x32xf32>
    %23 = vector.broadcast %2 : vector<1x32xf32> to vector<8x32xf32>
    %24 = arith.mulf %23, %22 : vector<8x32xf32>
    %25 = vector.broadcast %3 : vector<1x32xf32> to vector<8x32xf32>
    %26 = arith.addf %24, %25 : vector<8x32xf32>
    %c0_10 = arith.constant 0 : index
    %c0_11 = arith.constant 0 : index
    %27 = vector.load %arg4[%c0_10, %c0_11] : memref<32x96xf32, #tpu.memory_space<vmem>>, vector<32x96xf32>
    %cst_12 = arith.constant dense<0.000000e+00> : vector<8x96xf32>
    %28 = tpu.matmul %26, %27, %cst_12 {dimension_numbers = #tpu.dot_dimension_numbers<[1], [0], [0], [1], [0, 0, 1, 1], [], []>} : vector<8x32xf32>, vector<32x96xf32>, vector<8x96xf32> -> vector<8x96xf32>
    %29 = vector.shape_cast %28 : vector<8x96xf32> to vector<1x8x96xf32>
    %30 = vector.extract_strided_slice %29 {offsets = [0, 0, 0], sizes = [1, 8, 8], strides = [1, 1, 1]} : vector<1x8x96xf32> to vector<1x8x8xf32>
    %31 = vector.extract_strided_slice %29 {offsets = [0, 0, 8], sizes = [1, 8, 8], strides = [1, 1, 1]} : vector<1x8x96xf32> to vector<1x8x8xf32>
    %32 = vector.extract_strided_slice %29 {offsets = [0, 0, 16], sizes = [1, 8, 8], strides = [1, 1, 1]} : vector<1x8x96xf32> to vector<1x8x8xf32>
    %33 = vector.extract_strided_slice %29 {offsets = [0, 0, 24], sizes = [1, 8, 8], strides = [1, 1, 1]} : vector<1x8x96xf32> to vector<1x8x8xf32>
    %34 = tpu.concatenate %30, %31, %32, %33 in 0 : vector<1x8x8xf32>, vector<1x8x8xf32>, vector<1x8x8xf32>, vector<1x8x8xf32> -> vector<4x8x8xf32>
    %cst_13 = arith.constant 0.353553385 : f32
    %35 = vector.broadcast %cst_13 : f32 to vector<4x8x8xf32>
    %36 = arith.mulf %34, %35 : vector<4x8x8xf32>
    %37 = vector.extract_strided_slice %29 {offsets = [0, 0, 32], sizes = [1, 8, 8], strides = [1, 1, 1]} : vector<1x8x96xf32> to vector<1x8x8xf32>
    %38 = vector.extract_strided_slice %29 {offsets = [0, 0, 40], sizes = [1, 8, 8], strides = [1, 1, 1]} : vector<1x8x96xf32> to vector<1x8x8xf32>
    %39 = vector.extract_strided_slice %29 {offsets = [0, 0, 48], sizes = [1, 8, 8], strides = [1, 1, 1]} : vector<1x8x96xf32> to vector<1x8x8xf32>
    %40 = vector.extract_strided_slice %29 {offsets = [0, 0, 56], sizes = [1, 8, 8], strides = [1, 1, 1]} : vector<1x8x96xf32> to vector<1x8x8xf32>
    %41 = tpu.concatenate %37, %38, %39, %40 in 0 : vector<1x8x8xf32>, vector<1x8x8xf32>, vector<1x8x8xf32>, vector<1x8x8xf32> -> vector<4x8x8xf32>
    %42 = vector.extract_strided_slice %29 {offsets = [0, 0, 64], sizes = [1, 8, 8], strides = [1, 1, 1]} : vector<1x8x96xf32> to vector<1x8x8xf32>
    %43 = vector.extract_strided_slice %29 {offsets = [0, 0, 72], sizes = [1, 8, 8], strides = [1, 1, 1]} : vector<1x8x96xf32> to vector<1x8x8xf32>
    %44 = vector.extract_strided_slice %29 {offsets = [0, 0, 80], sizes = [1, 8, 8], strides = [1, 1, 1]} : vector<1x8x96xf32> to vector<1x8x8xf32>
    %45 = vector.extract_strided_slice %29 {offsets = [0, 0, 88], sizes = [1, 8, 8], strides = [1, 1, 1]} : vector<1x8x96xf32> to vector<1x8x8xf32>
    %46 = tpu.concatenate %42, %43, %44, %45 in 0 : vector<1x8x8xf32>, vector<1x8x8xf32>, vector<1x8x8xf32>, vector<1x8x8xf32> -> vector<4x8x8xf32>
    %47 = tpu.iota {dimensions = array<i32: 0>} : vector<8x8xi32>
    %48 = tpu.iota {dimensions = array<i32: 1>} : vector<8x8xi32>
    %49 = arith.cmpi sgt, %48, %47 : vector<8x8xi32>
    %50 = vector.shape_cast %49 : vector<8x8xi1> to vector<1x8x8xi1>
    "tpu.trace_start"() <{level = 10 : i32, message = "gid,gjd->gij"}> : () -> ()
    %cst_14 = arith.constant dense<0.000000e+00> : vector<4x8x8xf32>
    %51 = tpu.matmul %41, %36, %cst_14 {dimension_numbers = #tpu.dot_dimension_numbers<[2], [2], [1], [1], [0, 0, 0, 1, 1, 1], [0], [0]>} : vector<4x8x8xf32>, vector<4x8x8xf32>, vector<4x8x8xf32> -> vector<4x8x8xf32>
    %cst_15 = arith.constant 0xFF800000 : f32
    "tpu.trace_stop"() : () -> ()
    %52 = vector.shape_cast %50 : vector<1x8x8xi1> to vector<1x8x8xi1>
    %53 = vector.broadcast %52 : vector<1x8x8xi1> to vector<4x8x8xi1>
    %54 = vector.broadcast %cst_15 : f32 to vector<4x8x8xf32>
    %55 = arith.select %53, %54, %51 : vector<4x8x8xi1>, vector<4x8x8xf32>
    %cst_16 = arith.constant dense<0xFF800000> : vector<4x8xf32>
    %56 = vector.multi_reduction <maximumf>, %55, %cst_16 [2] : vector<4x8x8xf32> to vector<4x8xf32>
    %57 = vector.shape_cast %56 : vector<4x8xf32> to vector<4x8x1xf32>
    %58 = vector.broadcast %57 : vector<4x8x1xf32> to vector<4x8x8xf32>
    %59 = arith.subf %55, %58 : vector<4x8x8xf32>
    %60 = math.exp %59 : vector<4x8x8xf32>
    %cst_17 = arith.constant dense<0.000000e+00> : vector<4x8xf32>
    %61 = vector.multi_reduction <add>, %60, %cst_17 [2] : vector<4x8x8xf32> to vector<4x8xf32>
    %62 = vector.shape_cast %61 : vector<4x8xf32> to vector<4x8x1xf32>
    %63 = tpu.reciprocal %62 {approx = true} : vector<4x8x1xf32> -> vector<4x8x1xf32>
    %64 = vector.broadcast %63 : vector<4x8x1xf32> to vector<4x8x8xf32>
    %65 = arith.mulf %60, %64 : vector<4x8x8xf32>
    "tpu.trace_start"() <{level = 10 : i32, message = "gij,gjd->gid"}> : () -> ()
    %cst_18 = arith.constant dense<0.000000e+00> : vector<4x8x8xf32>
    %66 = tpu.matmul %65, %46, %cst_18 {dimension_numbers = #tpu.dot_dimension_numbers<[2], [1], [1], [2], [0, 0, 0, 1, 1, 2], [0], [0]>} : vector<4x8x8xf32>, vector<4x8x8xf32>, vector<4x8x8xf32> -> vector<4x8x8xf32>
    "tpu.trace_stop"() : () -> ()
    %67 = vector.extract_strided_slice %66 {offsets = [0, 0, 0], sizes = [1, 8, 8], strides = [1, 1, 1]} : vector<4x8x8xf32> to vector<1x8x8xf32>
    %68 = vector.shape_cast %67 : vector<1x8x8xf32> to vector<8x8xf32>
    %69 = vector.extract_strided_slice %66 {offsets = [1, 0, 0], sizes = [1, 8, 8], strides = [1, 1, 1]} : vector<4x8x8xf32> to vector<1x8x8xf32>
    %70 = vector.shape_cast %69 : vector<1x8x8xf32> to vector<8x8xf32>
    %71 = vector.extract_strided_slice %66 {offsets = [2, 0, 0], sizes = [1, 8, 8], strides = [1, 1, 1]} : vector<4x8x8xf32> to vector<1x8x8xf32>
    %72 = vector.shape_cast %71 : vector<1x8x8xf32> to vector<8x8xf32>
    %73 = vector.extract_strided_slice %66 {offsets = [3, 0, 0], sizes = [1, 8, 8], strides = [1, 1, 1]} : vector<4x8x8xf32> to vector<1x8x8xf32>
    %74 = vector.shape_cast %73 : vector<1x8x8xf32> to vector<8x8xf32>
    %75 = tpu.concatenate %68, %70, %72, %74 in 1 : vector<8x8xf32>, vector<8x8xf32>, vector<8x8xf32>, vector<8x8xf32> -> vector<8x32xf32>
    %c0_19 = arith.constant 0 : index
    %c0_20 = arith.constant 0 : index
    %76 = vector.load %arg5[%c0_19, %c0_20] : memref<32x32xf32, #tpu.memory_space<vmem>>, vector<32x32xf32>
    %cst_21 = arith.constant dense<0.000000e+00> : vector<8x32xf32>
    %77 = tpu.matmul %75, %76, %cst_21 {dimension_numbers = #tpu.dot_dimension_numbers<[1], [0], [0], [1], [0, 0, 1, 1], [], []>} : vector<8x32xf32>, vector<32x32xf32>, vector<8x32xf32> -> vector<8x32xf32>
    %c0_22 = arith.constant 0 : index
    %c0_23 = arith.constant 0 : index
    %78 = vector.load %arg6[%c0_22, %c0_23] : memref<1x32xf32, #tpu.memory_space<vmem>>, vector<1x32xf32>
    %79 = vector.broadcast %78 : vector<1x32xf32> to vector<8x32xf32>
    %80 = arith.addf %77, %79 : vector<8x32xf32>
    %81 = arith.addf %1, %80 : vector<8x32xf32>
    %c0_24 = arith.constant 0 : index
    %c0_25 = arith.constant 0 : index
    %82 = vector.load %arg7[%c0_24, %c0_25] : memref<1x32xf32, #tpu.memory_space<vmem>>, vector<1x32xf32>
    %c0_26 = arith.constant 0 : index
    %c0_27 = arith.constant 0 : index
    %83 = vector.load %arg8[%c0_26, %c0_27] : memref<1x32xf32, #tpu.memory_space<vmem>>, vector<1x32xf32>
    %cst_28 = arith.constant dense<0.000000e+00> : vector<8xf32>
    %84 = vector.multi_reduction <add>, %81, %cst_28 [1] : vector<8x32xf32> to vector<8xf32>
    %85 = vector.shape_cast %84 : vector<8xf32> to vector<8x1xf32>
    %cst_29 = arith.constant 3.200000e+01 : f32
    %86 = vector.broadcast %cst_29 : f32 to vector<8x1xf32>
    %87 = arith.divf %85, %86 : vector<8x1xf32>
    %88 = vector.broadcast %87 : vector<8x1xf32> to vector<8x32xf32>
    %89 = arith.subf %81, %88 : vector<8x32xf32>
    %90 = arith.mulf %89, %89 : vector<8x32xf32>
    %cst_30 = arith.constant dense<0.000000e+00> : vector<8xf32>
    %91 = vector.multi_reduction <add>, %90, %cst_30 [1] : vector<8x32xf32> to vector<8xf32>
    %92 = vector.shape_cast %91 : vector<8xf32> to vector<8x1xf32>
    %cst_31 = arith.constant 0.0322580636 : f32
    %93 = vector.broadcast %cst_31 : f32 to vector<8x1xf32>
    %94 = arith.mulf %92, %93 : vector<8x1xf32>
    %95 = math.sqrt %94 : vector<8x1xf32>
    %cst_32 = arith.constant 9.99999974E-6 : f32
    %96 = vector.broadcast %cst_32 : f32 to vector<8x1xf32>
    %97 = arith.addf %95, %96 : vector<8x1xf32>
    %98 = tpu.reciprocal %97 {approx = true} : vector<8x1xf32> -> vector<8x1xf32>
    %99 = vector.broadcast %87 : vector<8x1xf32> to vector<8x32xf32>
    %100 = arith.subf %81, %99 : vector<8x32xf32>
    %101 = vector.broadcast %98 : vector<8x1xf32> to vector<8x32xf32>
    %102 = arith.mulf %100, %101 : vector<8x32xf32>
    %103 = vector.broadcast %82 : vector<1x32xf32> to vector<8x32xf32>
    %104 = arith.mulf %103, %102 : vector<8x32xf32>
    %105 = vector.broadcast %83 : vector<1x32xf32> to vector<8x32xf32>
    %106 = arith.addf %104, %105 : vector<8x32xf32>
    %c0_33 = arith.constant 0 : index
    %c0_34 = arith.constant 0 : index
    %107 = vector.load %arg10[%c0_33, %c0_34] : memref<1x128xf32, #tpu.memory_space<vmem>>, vector<1x128xf32>
    %cst_35 = arith.constant 0.000000e+00 : f32
    %108 = vector.broadcast %cst_35 : f32 to vector<8x32xf32>
    %c0_36 = arith.constant 0 : index
    %c0_37 = arith.constant 0 : index
    %109 = vector.load %arg9[%c0_36, %c0_37] : memref<32x128xf32, #tpu.memory_space<vmem>>, vector<32x128xf32>
    %cst_38 = arith.constant dense<0.000000e+00> : vector<8x128xf32>
    %110 = tpu.matmul %106, %109, %cst_38 {dimension_numbers = #tpu.dot_dimension_numbers<[1], [0], [0], [1], [0, 0, 1, 1], [], []>} : vector<8x32xf32>, vector<32x128xf32>, vector<8x128xf32> -> vector<8x128xf32>
    %111 = vector.broadcast %107 : vector<1x128xf32> to vector<8x128xf32>
    %112 = arith.addf %110, %111 : vector<8x128xf32>
    %cst_39 = arith.constant 5.000000e-01 : f32
    %113 = vector.broadcast %cst_39 : f32 to vector<8x128xf32>
    %114 = arith.mulf %113, %112 : vector<8x128xf32>
    %115 = arith.mulf %112, %112 : vector<8x128xf32>
    %116 = arith.mulf %112, %115 : vector<8x128xf32>
    %cst_40 = arith.constant 4.471500e-02 : f32
    %117 = vector.broadcast %cst_40 : f32 to vector<8x128xf32>
    %118 = arith.mulf %117, %116 : vector<8x128xf32>
    %119 = arith.addf %112, %118 : vector<8x128xf32>
    %cst_41 = arith.constant 0.797884583 : f32
    %120 = vector.broadcast %cst_41 : f32 to vector<8x128xf32>
    %121 = arith.mulf %120, %119 : vector<8x128xf32>
    %122 = math.tanh %121 : vector<8x128xf32>
    %cst_42 = arith.constant 1.000000e+00 : f32
    %123 = vector.broadcast %cst_42 : f32 to vector<8x128xf32>
    %124 = arith.addf %123, %122 : vector<8x128xf32>
    %125 = arith.mulf %114, %124 : vector<8x128xf32>
    %c0_43 = arith.constant 0 : index
    %c0_44 = arith.constant 0 : index
    %126 = vector.load %arg11[%c0_43, %c0_44] : memref<128x32xf32, #tpu.memory_space<vmem>>, vector<128x32xf32>
    %cst_45 = arith.constant dense<0.000000e+00> : vector<8x32xf32>
    %127 = tpu.matmul %125, %126, %cst_45 {dimension_numbers = #tpu.dot_dimension_numbers<[1], [0], [0], [1], [0, 0, 1, 1], [], []>} : vector<8x128xf32>, vector<128x32xf32>, vector<8x32xf32> -> vector<8x32xf32>
    %128 = arith.addf %108, %127 : vector<8x32xf32>
    %c0_46 = arith.constant 0 : index
    %c0_47 = arith.constant 0 : index
    %129 = vector.load %arg12[%c0_46, %c0_47] : memref<1x32xf32, #tpu.memory_space<vmem>>, vector<1x32xf32>
    %130 = vector.broadcast %129 : vector<1x32xf32> to vector<8x32xf32>
    %131 = arith.addf %128, %130 : vector<8x32xf32>
    %132 = arith.addf %81, %131 : vector<8x32xf32>
    %133 = vector.shape_cast %132 : vector<8x32xf32> to vector<1x8x32xf32>
    %c0_48 = arith.constant 0 : index
    %c0_49 = arith.constant 0 : index
    %c0_50 = arith.constant 0 : index
    %134 = vector.load %arg13[%c0_48, %c0_49, %c0_50] : memref<1x8x32xf32, #tpu.memory_space<vmem>>, vector<1x8x32xf32>
    tpu.vector_store %arg13[%c0_48, %c0_49, %c0_50], %133 {strides = array<i32>} : memref<1x8x32xf32, #tpu.memory_space<vmem>>, vector<1x8x32xf32>,
    return
  }
  func.func @transform_0(%arg0: i32) -> (i32, i32, i32) {
    %c0_i32 = arith.constant 0 : i32
    %c0_i32_0 = arith.constant 0 : i32
    %c0_i32_1 = arith.constant 0 : i32
    return %arg0, %c0_i32, %c0_i32_0 : i32, i32, i32
  }
  func.func @transform_1(%arg0: i32) -> (i32, i32) {
    %c0_i32 = arith.constant 0 : i32
    %c0_i32_0 = arith.constant 0 : i32
    %c0_i32_1 = arith.constant 0 : i32
    return %c0_i32, %c0_i32_0 : i32, i32
  }
  func.func @transform_2(%arg0: i32) -> (i32, i32) {
    %c0_i32 = arith.constant 0 : i32
    %c0_i32_0 = arith.constant 0 : i32
    %c0_i32_1 = arith.constant 0 : i32
    return %c0_i32, %c0_i32_0 : i32, i32
  }
  func.func @transform_3(%arg0: i32) -> (i32, i32) {
    %c0_i32 = arith.constant 0 : i32
    %c0_i32_0 = arith.constant 0 : i32
    %c0_i32_1 = arith.constant 0 : i32
    return %c0_i32, %c0_i32_0 : i32, i32
  }
  func.func @transform_4(%arg0: i32) -> (i32, i32) {
    %c0_i32 = arith.constant 0 : i32
    %c0_i32_0 = arith.constant 0 : i32
    %c0_i32_1 = arith.constant 0 : i32
    return %c0_i32, %c0_i32_0 : i32, i32
  }
  func.func @transform_5(%arg0: i32) -> (i32, i32) {
    %c0_i32 = arith.constant 0 : i32
    %c0_i32_0 = arith.constant 0 : i32
    %c0_i32_1 = arith.constant 0 : i32
    return %c0_i32, %c0_i32_0 : i32, i32
  }
  func.func @transform_6(%arg0: i32) -> (i32, i32) {
    %c0_i32 = arith.constant 0 : i32
    %c0_i32_0 = arith.constant 0 : i32
    %c0_i32_1 = arith.constant 0 : i32
    return %c0_i32, %c0_i32_0 : i32, i32
  }
  func.func @transform_7(%arg0: i32) -> (i32, i32) {
    %c0_i32 = arith.constant 0 : i32
    %c0_i32_0 = arith.constant 0 : i32
    %c0_i32_1 = arith.constant 0 : i32
    return %c0_i32, %c0_i32_0 : i32, i32
  }
  func.func @transform_8(%arg0: i32) -> (i32, i32) {
    %c0_i32 = arith.constant 0 : i32
    %c0_i32_0 = arith.constant 0 : i32
    %c0_i32_1 = arith.constant 0 : i32
    return %c0_i32, %c0_i32_0 : i32, i32
  }
  func.func @transform_9(%arg0: i32) -> (i32, i32) {
    %c0_i32 = arith.constant 0 : i32
    %c0_i32_0 = arith.constant 0 : i32
    %c0_i32_1 = arith.constant 0 : i32
    return %c0_i32, %c0_i32_0 : i32, i32
  }
  func.func @transform_10(%arg0: i32) -> (i32, i32) {
    %c0_i32 = arith.constant 0 : i32
    %c0_i32_0 = arith.constant 0 : i32
    %c0_i32_1 = arith.constant 0 : i32
    return %c0_i32, %c0_i32_0 : i32, i32
  }
  func.func @transform_11(%arg0: i32) -> (i32, i32) {
    %c0_i32 = arith.constant 0 : i32
    %c0_i32_0 = arith.constant 0 : i32
    %c0_i32_1 = arith.constant 0 : i32
    return %c0_i32, %c0_i32_0 : i32, i32
  }
  func.func @transform_12(%arg0: i32) -> (i32, i32, i32) {
    %c0_i32 = arith.constant 0 : i32
    %c0_i32_0 = arith.constant 0 : i32
    %c0_i32_1 = arith.constant 0 : i32
    return %arg0, %c0_i32, %c0_i32_0 : i32, i32, i32
  }
}

</mosaic_0001>

<bundles_post_ra>
// kernel: tpu_custom_call.1
= control target key start
LH: loop header
LB: loop body
LE: loop exit
PB: predicated region body
PF: predicated region fallthrough
CT: control target
= control target key end

     0   :  { %s2374_s0 = inlined_call_operand.vmem [shape: f32[2,8,32], index: 0, kind: input, shape index: {}]   ;;  %s2375_s1 = inlined_call_operand.vmem [shape: f32[1,32], index: 1, kind: input, shape index: {}]   ;;  %s2376_s2 = inlined_call_operand.vmem [shape: f32[1,32], index: 2, kind: input, shape index: {}]   ;;  %s2377_s3 = inlined_call_operand.vmem [shape: f32[32,96], index: 3, kind: input, shape index: {}]   ;;  %s2378_s4 = inlined_call_operand.vmem [shape: f32[32,32], index: 4, kind: input, shape index: {}]   ;;  %s2379_s5 = inlined_call_operand.vmem [shape: f32[1,32], index: 5, kind: input, shape index: {}]   ;;  %s2380_s6 = inlined_call_operand.vmem [shape: f32[1,32], index: 6, kind: input, shape index: {}]   ;;  %s2381_s7 = inlined_call_operand.vmem [shape: f32[1,32], index: 7, kind: input, shape index: {}]   ;;  %s2382_s8 = inlined_call_operand.vmem [shape: f32[32,128], index: 8, kind: input, shape index: {}]   ;;  %s2383_s9 = inlined_call_operand.vmem [shape: f32[1,128], index: 9, kind: input, shape index: {}]   ;;  %s2384_s10 = inlined_call_operand.vmem [shape: f32[128,32], index: 10, kind: input, shape index: {}]   ;;  %s2385_s11 = inlined_call_operand.vmem [shape: f32[1,32], index: 11, kind: input, shape index: {}]   ;;  %s2386_s12 = inlined_call_operand.hbm [shape: f32[2,8,32], index: 12, kind: output, shape index: {}]  }
   0x1   :  { %2387 = sst [smem:[#allocation5_spill]] %s2374_s0 }
   0x2   :  { %2388 = sst [smem:[#allocation6_spill]] %s2375_s1 }
   0x3   :  { %17 = vsyncpa [#allocation3], 0 }
   0x4   :  { %19 = vsyncpa [#allocation3 + $0x1], 0  ;;  %s2053_s21 = smov 0   ;;  %s2055_s22 = smov 0  }
   0x5   :  { %s2057_s23 = smov 0   ;;  %s2059_s24 = smov 0  }
   0x6 LB: > { %s2074_s25 = sadd.s32 4294967295, %s1974_s24   ;;  %s1606_s26 = sadd.s32 4294967294, %s1974_s24   ;;  %s1974_s24 = sphi %s2059_s24, %s2396_s24   ;;  %s1970_s23 = sphi %s2057_s23, %s2395_s23   ;;  %s1966_s22 = sphi %s2055_s22, %s2394_s22   ;;  %s1962_s21 = sphi %s2053_s21, %s2393_s21  }
   0x7   : > { %s2078_s27 = sadd.s32 1, %s1974_s24   ;;  %s289_s28 = sadd.s32 1, %s1970_s23 }
   0x8   : > { %s286_s29 = ssub.s32 %s1974_s24, %s2078_s27  ;;  %p299_p0 = scmp.ne.s32.totalorder %s1970_s23, %s1966_s22 }
   0x9   : > { %p287_p1 = scmp.eq.s32.totalorder %s286_s29, 0  ;;  %p300_p2 = scmp.eq.s32.totalorder %s2074_s25, 1 }
   0xa   : > { %p305_p3 = scmp.ne.s32.totalorder %s1966_s22, %s1962_s21  ;;  %p306_p4 = scmp.eq.s32.totalorder %s1606_s26, 1 }
   0xb   : > { %s2089_s30 = scalar_select %p287_p1, %s1970_s23, %s289_s28  }
   0xc   : > { %p2091_p5 = por %p300_p2, %p299_p0  ;;  %p2095_p6 = por %p306_p4, %p305_p3 }
   0xd   : > { %p1609_p7 = scmp.ge.s32.totalorder %s1974_s24, 1  ;;  %p364_p8 = scmp.lt.s32.totalorder %s1974_s24, 3 }
   0xf   : > { %p365_p9 = pnand %p1609_p7, %p364_p8 }
  0x10   : > { %p405_p10 = scmp.lt.s32.totalorder (!%p365_p9), %s2074_s25, 1  ;;  %vm412_vm0 = vcmask (!%p365_p9), 261120   ;;  %s2391_s0 = sld [smem:[#allocation5_spill]] (!%p365_p9)  ;;  %v448_v7 = vld [vmem:[%s2377_s3] sm:$0xff] (!%p365_p9)  ;;  %v449_v8 = vld [vmem:[%s2377_s3 + $0x8] sm:$0xff] (!%p365_p9)  ;;  %v450_v9 = vld [vmem:[%s2377_s3 + $0x10] sm:$0xff] (!%p365_p9)  ;;  %v539_v42 = vlaneseq (!%p365_p9) }
  0x11   : > { %368 = sbr.rel (%p365_p9) target bundleno = 2675 (0xa73), region = 68  ;;  %v1976_v10 = vmov (!%p365_p9), 0.0|0.0   ;;  %v1795_v11 = vpack.c.bf16 (!%p365_p9), %v449_v8, %v448_v7  ;;  %v451_v12 = vld [vmem:[%s2377_s3 + $0x18] sm:$0xff] (!%p365_p9)  ;;  %vm1977_vm1 = vmmov (!%p365_p9), 0   ;;  %v1978_v13 = vmov (!%p365_p9), 0.0   ;;  %s2392_s1 = sld [smem:[#allocation6_spill]] (!%p365_p9) }
  0x12   : > { %1794 = vmatprep.subr.bf16.mxu1 (!%p365_p9), %v1976_v10  ;;  %1694 = vmatprep.mubr.msk.f32.mxu1 (!%p365_p9), %vm1977_vm1, %v1978_v13  ;;  %v1798_v14 = vpack.c.bf16 (!%p365_p9), %v451_v12, %v450_v9  ;;  %v1613_v26 = vld [vmem:[%s2376_s2] ss:$0 sm:$0xff] (!%p365_p9)  ;;  %vm546_vm4 = vcmask (!%p365_p9), 64512   ;;  %s1979_s29 = smov (!%p365_p9), 104   ;;  %s1982_s17 = smov (!%p365_p9), 96   ;;  %v540_v43 = vshrl.u32 (!%p365_p9), %v539_v42, 7 }
  0x13   : > { %1707 = vmatprep.subr.mxu0 (!%p365_p9), %v1978_v13  ;;  %1709 = vmatprep.mubr.msk.f32.mxu0 (!%p365_p9), %vm1977_vm1, %v1978_v13  ;;  %v542_v44 = vand.u32 (!%p365_p9), 127, %v539_v42  ;;  %s1983_s18 = smov (!%p365_p9), 64   ;;  %v1227_v42 = vld [vmem:[%s2378_s4 + $0x18] sm:$0xff] (!%p365_p9)  ;;  %s1986_s20 = smov (!%p365_p9), 24   ;;  %vm1220_vm6 = vcmask (!%p365_p9), 130048   ;;  %vm1222_vm7 = vcmask (!%p365_p9), 195584  }
  0x14   : > { %1796 = vmatpush3.bf16.msra.mxu1 (!%p365_p9), %v1795_v11 }
  0x15   : > { %1797 = vmatprep.subr.bf16.mxu1 (!%p365_p9), %v1976_v10  ;;  %vm543_vm5 = vcmp.gt.s32.totalorder (!%p365_p9), %v542_v44, %v540_v43 }
  0x17   : > { %v1612_v24 = vld [vmem:[%s2392_s1] ss:$0 sm:$0xff] (!%p365_p9) }
  0x18   : > { %s406_s15 = scalar_select %p405_p10, %s2074_s25, 1  ;;  %1799 = vmatpush3.bf16.msra.mxu1 %v1798_v14 }
  0x19   : > { %1697 = vmatprep.subr.mxu1 %v1978_v13 }
  0x1a   : > { %s1611_s16 = sshll.u32 %s406_s15, 3  ;;  %s1980_s15 = smov 120  }
  0x1b   : > { %s408_s19 = scalar_lea.vmem %s2391_s0, %s1611_s16  ;;  %s1981_s16 = smov 112  }
  0x1c   : > { %v2106_v0 = vld [vmem:[%s408_s19] sm:$0xff]  ;;  %s1985_s19 = smov 16  }
  0x1d   : > { %v413_v1 = vsel %vm412_vm0, %v2106_v0, 0.0 }
  0x1e   : > { %414 = vadd.xlane.f32.xlu0 %v413_v1 }
  0xab   : > { %v415_v2 = vpop.xlane.xlu0 %414 }
  0xac   : > { %v417_v3 = vmul.f32 0.03125, %v415_v2 }
  0xae   : > { %v418_v4 = vsub.f32 %v2106_v0, %v417_v3 }
  0xb0   : > { %v419_v5 = vmul.f32 %v418_v4, %v418_v4 }
  0xb2   : > { %v420_v6 = vsel %vm412_vm0, %v419_v5, 0.0 }
  0xb3   : > { %421 = vadd.xlane.f32.xlu0 %v420_v6 }
 0x140   : > { %v422_v15 = vpop.xlane.xlu0 %421 }
 0x141   : > { %v423_v16 = vmul.f32 0.032258064, %v422_v15 }
 0x143   : > { %1886 = vrsqrt.f32 %v423_v16  ;;  %vm426_vm2 = vcmp.eq.f32.partialorder %v423_v16, inf  ;;  %v429_v19 = vand.u32 2147483648, %v423_v16  ;;  %vm428_vm3 = vcmp.eq.f32.partialorder %v423_v16, 0.0 }
 0x14d   : > { %v1887_v17 = vpop.eup %1886 }
 0x14e   : > { %v425_v18 = vmul.f32 %v1887_v17, %v423_v16 }
 0x150   : > { %v427_v20 = vsel %vm426_vm2, %v423_v16, %v425_v18 }
 0x151   : > { %v430_v21 = vsel %vm428_vm3, %v429_v19, %v427_v20 }
 0x152   : > { %v431_v22 = vadd.f32 1e-05, %v430_v21 }
 0x154   : > { %1888 = vrcp.f32 %v431_v22 }
 0x15e   : > { %v1889_v23 = vpop.eup %1888 }
 0x15f   : > { %v433_v25 = vmul.f32 %v1889_v23, %v418_v4 }
 0x161   : > { %v440_v27 = vmul.f32 %v1612_v24, %v433_v25 }
 0x163   : > { %v447_v28 = vadd.f32 %v1613_v26, %v440_v27 }
 0x165   : > { %1695 = vmatmul.mubr.msk.f32.vlgmr.msra.gmra.mrb[0].mxu1 %vm412_vm0, %v447_v28 }
 0x166   : > { %1699 = vmatprep.mubr.msk.f32.mxu1 %vm1977_vm1, %v1978_v13 }
 0x238   : > { %v2141_v29 = vpop.f32.mrb[0].mxu1 }
 0x239   : > { %v535_v30 = vmul.f32 0.35355338, %v2141_v29  ;;  %532 = vrot.lane.b32.xlu0 %v2141_v29, %s1979_s29  ;;  %526 = vrot.lane.b32.xlu1 %v2141_v29, %s1980_s15  ;;  %v1696_v31 = vpop.f32.mrb[1].mxu1  ;;  %s402_s15 = sand.u32 1, %s1966_s22  }
 0x23b   : > { %1698 = vmatpush3.xpose.msk.msra.mxu1 %vm546_vm4, %v535_v30 }
 0x23c   : > { %1702 = vmatprep.subr.mxu1 %v1978_v13 }
 0x23d   : > { %529 = vrot.lane.b32.xlu1 %v2141_v29, %s1981_s16  ;;  %s1610_s16 = sshll.u32 %s402_s15, 3 }
 0x241   : > { %544 = vrot.lane.b32.xlu1 %v2141_v29, %s1982_s17 }
 0x2ab   : > { %v2150_v32 = vpop.permute.xlu1 %526  ;;  %v2158_v35 = vpop.permute.xlu0 %532 }
 0x2ac   : > { %622 = vrot.lane.b32.xlu1 %v2150_v32, %s1982_s17  ;;  %v536_v36 = vmul.f32 0.35355338, %v2150_v32  ;;  %v538_v38 = vmul.f32 0.35355338, %v2158_v35 }
 0x2af   : > { %v2153_v33 = vpop.permute.xlu1 %529 }
 0x2b0   : > { %v537_v34 = vmul.f32 0.35355338, %v2153_v33  ;;  %699 = vrot.lane.b32.xlu1 %v2153_v33, %s1982_s17 }
 0x2b2   : > { %1708 = vmatpush3.xpose.msk.msra.mxu0 %vm546_vm4, %v537_v34 }
 0x2b3   : > { %v545_v37 = vpop.permute.xlu1 %544  ;;  %1717 = vmatprep.subr.mxu0 %v1978_v13 }
 0x2b4   : > { %776 = vrot.lane.b32.xlu1 %v2158_v35, %s1982_s17  ;;  %1700 = vmatmul.mubr.msk.f32.vlgmr.msra.gmra.mrb[2].mxu1 %vm546_vm4, %v545_v37  ;;  %s1534_s17 = scalar_lea.sflag [#allocation3], %s402_s15 }
 0x2b5   : > { %1703 = vmatpush3.xpose.msk.msra.mxu1 %vm546_vm4, %v536_v36  ;;  %1704 = vmatprep.mubr.msk.f32.mxu1 %vm1977_vm1, %v1978_v13 }
 0x2b6   : > { %1712 = vmatprep.subr.mxu1 %v1978_v13 }
 0x31e   : > { %v623_v39 = vpop.permute.xlu1 %622 }
 0x31f   : > { %1705 = vmatmul.mubr.msk.f32.vlgmr.msra.gmra.mrb[4].mxu1 %vm546_vm4, %v623_v39  ;;  %v1225_v39 = vld [vmem:[%s2378_s4 + $0x8] sm:$0xff] }
 0x320   : > { %1713 = vmatpush3.xpose.msk.msra.mxu1 %vm546_vm4, %v538_v38  ;;  %1714 = vmatprep.mubr.msk.f32.mxu1 %vm1977_vm1, %v1978_v13  ;;  %v1224_v38 = vld [vmem:[%s2378_s4] sm:$0xff] }
 0x321   : > { %1722 = vmatprep.subr.mxu1 %v1978_v13 }
 0x322   : > { %v700_v40 = vpop.permute.xlu1 %699 }
 0x323   : > { %1710 = vmatmul.mubr.msk.f32.vlgmr.msra.gmra.mrb[0].mxu0 %vm546_vm4, %v700_v40  ;;  %v1801_v40 = vpack.c.bf16 %v1225_v39, %v1224_v38  ;;  %v1448_v39 = vld [vmem:[%s2384_s10 + $0x50] sm:$0xff] }
 0x324   : > { %1719 = vmatprep.mubr.msk.f32.mxu0 %vm1977_vm1, %v1978_v13 }
 0x326   : > { %v777_v41 = vpop.permute.xlu1 %776 }
 0x327   : > { %1715 = vmatmul.mubr.msk.f32.vlgmr.msra.gmra.mrb[6].mxu1 %vm546_vm4, %v777_v41  ;;  %v1226_v41 = vld [vmem:[%s2378_s4 + $0x10] sm:$0xff] }
 0x328   : > { %1724 = vmatprep.mubr.msk.f32.mxu1 %vm1977_vm1, %v1978_v13  ;;  %v1804_v43 = vpack.c.bf16 %v1227_v42, %v1226_v41  ;;  %v1450_v42 = vld [vmem:[%s2384_s10 + $0x60] sm:$0xff] }
 0x387   : > { %v618_v45 = vpop.f32.mrb[2].mxu1 }
 0x388   : > { %v855_v46 = vsel %vm543_vm5, -inf, %v618_v45  ;;  %v1701_v47 = vpop.f32.mrb[3].mxu1 }
 0x389   : > { %v859_v48 = vsel %vm546_vm4, %v855_v46, -inf }
 0x38a   : > { %860 = vmax.xlane.f32.xlu1 %v859_v48 }
 0x3f2   : > { %v695_v49 = vpop.f32.mrb[4].mxu1 }
 0x3f3   : > { %v856_v50 = vsel %vm543_vm5, -inf, %v695_v49  ;;  %v1706_v51 = vpop.f32.mrb[5].mxu1 }
 0x3f4   : > { %v862_v52 = vsel %vm546_vm4, %v856_v50, -inf }
 0x3f5   : > { %863 = vmax.xlane.f32.xlu0 %v862_v52 }
 0x3f6   : > { %v772_v53 = vpop.f32.mrb[0].mxu0 }
 0x3f7   : > { %v857_v54 = vsel %vm543_vm5, -inf, %v772_v53  ;;  %v1711_v55 = vpop.f32.mrb[1].mxu0 }
 0x3f8   : > { %v865_v56 = vsel %vm546_vm4, %v857_v54, -inf }
 0x3f9   : > { %866 = vmax.xlane.f32.xlu1 %v865_v56  ;;  %v1627_v56 = vld [vmem:[%s2379_s5] ss:$0 sm:$0xff] }
 0x3fa   : > { %v849_v57 = vpop.f32.mrb[6].mxu1 }
 0x3fb   : > { %v858_v58 = vsel %vm543_vm5, -inf, %v849_v57  ;;  %v1716_v59 = vpop.f32.mrb[7].mxu1 }
 0x3fc   : > { %v868_v60 = vsel %vm546_vm4, %v858_v58, -inf }
 0x3fd   : > { %869 = vmax.xlane.f32.xlu0 %v868_v60 }
 0x40a   : > { %903 = vrot.lane.b32.xlu1 %v2141_v29, %s1983_s18 }
 0x417   : > { %v861_v61 = vpop.xlane.xlu1 %860 }
 0x418   : > { %v871_v62 = vsub.f32 %v855_v46, %v861_v61 }
 0x41a   : > { %v875_v63 = vmul.f32 1.442695, %v871_v62 }
 0x41c   : > { %1890 = vpow2.f32 %v875_v63 }
 0x426   : > { %v1891_v1 = vpop.eup %1890 }
 0x427   : > { %v883_v2 = vsel %vm546_vm4, %v1891_v1, 0.0 }
 0x42e   : > { %884 = vadd.xlane.f32.xlu1 %v883_v2 }
 0x482   : > { %v864_v3 = vpop.xlane.xlu0 %863 }
 0x483   : > { %v872_v4 = vsub.f32 %v856_v50, %v864_v3  ;;  %v1346_v3 = vld [vmem:[%s2382_s8] sm:$0xff] }
 0x485   : > { %v877_v5 = vmul.f32 1.442695, %v872_v4  ;;  %v1348_v4 = vld [vmem:[%s2382_s8 + $0x10] sm:$0xff] }
 0x486   : > { %v867_v6 = vpop.xlane.xlu1 %866 }
 0x487   : > { %1892 = vpow2.f32 %v877_v5  ;;  %v873_v7 = vsub.f32 %v857_v54, %v867_v6  ;;  %v1349_v6 = vld [vmem:[%s2382_s8 + $0x18] sm:$0xff] }
 0x489   : > { %v879_v8 = vmul.f32 1.442695, %v873_v7  ;;  %v1810_v7 = vpack.c.bf16 %v1349_v6, %v1348_v4 }
 0x48a   : > { %v904_v9 = vpop.permute.xlu1 %903  ;;  %v870_v11 = vpop.xlane.xlu0 %869 }
 0x48b   : > { %1894 = vpow2.f32 %v879_v8  ;;  %v874_v12 = vsub.f32 %v858_v58, %v870_v11  ;;  %1718 = vmatpush3.msra.mxu0 %v904_v9  ;;  %v1438_v8 = vld [vmem:[%s2384_s10] sm:$0xff]  ;;  %v1439_v9 = vld [vmem:[%s2384_s10 + $0x8] sm:$0xff] }
 0x48c   : > { %1727 = vmatprep.subr.mxu0 %v1978_v13  ;;  %v1813_v11 = vpack.c.bf16 %v1439_v9, %v1438_v8 }
 0x48d   : > { %v881_v14 = vmul.f32 1.442695, %v874_v12 }
 0x48f   : > { %1896 = vpow2.f32 %v881_v14 }
 0x491   : > { %v1893_v15 = vpop.eup %1892 }
 0x492   : > { %v886_v16 = vsel %vm546_vm4, %v1893_v15, 0.0 }
 0x493   : > { %887 = vadd.xlane.f32.xlu0 %v886_v16 }
 0x495   : > { %v1895_v17 = vpop.eup %1894 }
 0x496   : > { %v889_v18 = vsel %vm546_vm4, %v1895_v17, 0.0 }
 0x497   : > { %890 = vadd.xlane.f32.xlu1 %v889_v18 }
 0x499   : > { %v1897_v19 = vpop.eup %1896 }
 0x49a   : > { %v892_v20 = vsel %vm546_vm4, %v1897_v19, 0.0 }
 0x49b   : > { %893 = vadd.xlane.f32.xlu0 %v892_v20 }
 0x4a8   : > { %1055 = vrot.lane.b32.xlu1 %v2153_v33, %s1983_s18 }
 0x4ac   : > { %1131 = vrot.lane.b32.xlu1 %v2158_v35, %s1983_s18 }
 0x4b1   : > { %979 = vrot.lane.b32.xlu0 %v2150_v32, %s1983_s18  ;;  %s1984_s18 = smov 8  }
 0x4bb   : > { %v885_v21 = vpop.xlane.xlu1 %884 }
 0x4bc   : > { %1898 = vrcp.f32 %v885_v21 }
 0x4c6   : > { %v1899_v22 = vpop.eup %1898 }
 0x4c7   : > { %v899_v23 = vmul.f32 %v1899_v22, %v1891_v1  ;;  %v1629_v22 = vld [vmem:[%s2380_s6] ss:$0 sm:$0xff] }
 0x4c9   : > { %1720 = vmatmul.mubr.msk.f32.vlgmr.msra.gmra.mrb[2].mxu0 %vm546_vm4, %v899_v23 }
 0x4ca   : > { %1729 = vmatprep.mubr.msk.f32.mxu0 %vm1977_vm1, %v1978_v13 }
 0x520   : > { %v888_v24 = vpop.xlane.xlu0 %887 }
 0x521   : > { %1900 = vrcp.f32 %v888_v24  ;;  %v1630_v24 = vld [vmem:[%s2381_s7] ss:$0 sm:$0xff] }
 0x524   : > { %v891_v25 = vpop.xlane.xlu1 %890 }
 0x525   : > { %1902 = vrcp.f32 %v891_v25 }
 0x528   : > { %v1056_v26 = vpop.permute.xlu1 %1055  ;;  %v894_v27 = vpop.xlane.xlu0 %893 }
 0x529   : > { %1904 = vrcp.f32 %v894_v27  ;;  %1728 = vmatpush3.msra.mxu0 %v1056_v26  ;;  %v1440_v27 = vld [vmem:[%s2384_s10 + $0x10] sm:$0xff] }
 0x52a   : > { %1812 = vmatprep.subr.bf16.mxu0 %v1976_v10 }
 0x52b   : > { %v1901_v28 = vpop.eup %1900 }
 0x52c   : > { %v900_v29 = vmul.f32 %v1901_v28, %v1893_v15  ;;  %v980_v30 = vpop.permute.xlu0 %979  ;;  %v1132_v31 = vpop.permute.xlu1 %1131  ;;  %v1441_v28 = vld [vmem:[%s2384_s10 + $0x18] sm:$0xff] }
 0x52d   : > { %1723 = vmatpush3.msra.mxu1 %v980_v30  ;;  %v1442_v30 = vld [vmem:[%s2384_s10 + $0x20] sm:$0xff] }
 0x52e   : > { %1725 = vmatmul.mubr.msk.f32.vlgmr.msra.gmra.mrb[8].mxu1 %vm546_vm4, %v900_v29  ;;  %1732 = vmatprep.subr.mxu1 %v1978_v13  ;;  %v1816_v29 = vpack.c.bf16 %v1441_v28, %v1440_v27 }
 0x52f   : > { %v1903_v32 = vpop.eup %1902  ;;  %1733 = vmatpush3.msra.mxu1 %v1132_v31  ;;  %1734 = vmatprep.mubr.msk.f32.mxu1 %vm1977_vm1, %v1978_v13  ;;  %v1443_v31 = vld [vmem:[%s2384_s10 + $0x28] sm:$0xff] }
 0x530   : > { %v901_v33 = vmul.f32 %v1903_v32, %v1895_v17  ;;  %1800 = vmatprep.subr.bf16.mxu1 %v1976_v10  ;;  %v1819_v32 = vpack.c.bf16 %v1443_v31, %v1442_v30 }
 0x532   : > { %1730 = vmatmul.mubr.msk.f32.vlgmr.msra.gmra.mrb[4].mxu0 %vm546_vm4, %v901_v33  ;;  %v1444_v33 = vld [vmem:[%s2384_s10 + $0x30] sm:$0xff] }
 0x533   : > { %v1905_v34 = vpop.eup %1904  ;;  %1791 = vmatprep.mubr.msk.f32.mxu0 %vm1977_vm1, %v1978_v13  ;;  %1814 = vmatpush3.bf16.msra.mxu0 %v1813_v11 }
 0x534   : > { %v902_v35 = vmul.f32 %v1905_v34, %v1897_v19  ;;  %1815 = vmatprep.subr.bf16.mxu0 %v1976_v10  ;;  %v1445_v34 = vld [vmem:[%s2384_s10 + $0x38] sm:$0xff] }
 0x536   : > { %1735 = vmatmul.mubr.msk.f32.vlgmr.msra.gmra.mrb[10].mxu1 %vm546_vm4, %v902_v35  ;;  %v1822_v35 = vpack.c.bf16 %v1445_v34, %v1444_v33 }
 0x537   : > { %1745 = vmatprep.mubr.msk.f32.mxu1 %vm1977_vm1, %v1978_v13  ;;  %1802 = vmatpush3.bf16.msra.mxu1 %v1801_v40  ;;  %v1449_v40 = vld [vmem:[%s2384_s10 + $0x58] sm:$0xff] }
 0x538   : > { %1803 = vmatprep.subr.bf16.mxu1 %v1976_v10  ;;  %1817 = vmatpush3.bf16.msra.mxu0 %v1816_v29  ;;  %v1828_v41 = vpack.c.bf16 %v1449_v40, %v1448_v39 }
 0x539   : > { %1818 = vmatprep.subr.bf16.mxu0 %v1976_v10 }
 0x53b   : > { %1805 = vmatpush3.bf16.msra.mxu1 %v1804_v43  ;;  %v1451_v43 = vld [vmem:[%s2384_s10 + $0x68] sm:$0xff] }
 0x53c   : > { %1806 = vmatprep.subr.bf16.mxu1 %v1976_v10  ;;  %1820 = vmatpush3.bf16.msra.mxu0 %v1819_v32 }
 0x53d   : > { %1821 = vmatprep.subr.bf16.mxu0 %v1976_v10 }
 0x540   : > { %1823 = vmatpush3.bf16.msra.mxu0 %v1822_v35 }
 0x541   : > { %1824 = vmatprep.subr.bf16.mxu0 %v1976_v10 }
 0x59c   : > { %v975_v36 = vpop.f32.mrb[2].mxu0 }
 0x59d   : > { %v1721_v37 = vpop.f32.mrb[3].mxu0 }
 0x59e   : > { %v1447_v37 = vld [vmem:[%s2384_s10 + $0x48] sm:$0xff] }
 0x601   : > { %v1051_v44 = vpop.f32.mrb[8].mxu1 }
 0x602   : > { %1208 = vrot.lane.b32.xlu0 %v1051_v44, %s1984_s18  ;;  %v1726_v45 = vpop.f32.mrb[9].mxu1  ;;  %v1831_v44 = vpack.c.bf16 %v1451_v43, %v1450_v42 }
 0x603   : > { %v1452_v45 = vld [vmem:[%s2384_s10 + $0x70] sm:$0xff] }
 0x605   : > { %v1127_v46 = vpop.f32.mrb[4].mxu0 }
 0x606   : > { %1212 = vrot.lane.b32.xlu1 %v1127_v46, %s1985_s19  ;;  %v1731_v47 = vpop.f32.mrb[5].mxu0  ;;  %v1453_v46 = vld [vmem:[%s2384_s10 + $0x78] sm:$0xff]  ;;  %s1635_s19 = sshll.u32 %s2074_s25, 7 }
 0x607   : > { %v1834_v47 = vpack.c.bf16 %v1453_v46, %v1452_v45  ;;  %s2331_s0 = scalar_lea.hbm %s2386_s12, %s1635_s19 }
 0x609   : > { %v1203_v48 = vpop.f32.mrb[10].mxu1 }
 0x60a   : > { %1216 = vrot.lane.b32.xlu0 %v1203_v48, %s1986_s20  ;;  %v1736_v49 = vpop.f32.mrb[11].mxu1  ;;  %v1631_v48 = vld [vmem:[%s2383_s9] ss:$0 sm:$0xff]  ;;  %s404_s20 = scalar_lea.vmem [#allocation2], %s1610_s16  ;;  %s1987_s16 = smov [#allocation2]  }
 0x60b   : > { %s1547_s26 = sshll.u32 %s404_s20, 4  ;;  %s1916_s18 = sshll.u32 %s1987_s16, 4  ;;  %s2333_s26 = int_to_ptr.vmem [resolvable:$true] %s1547_s26  ;;  %s1917_s18 = int_to_ptr.vmem [resolvable:$false] %s1916_s18 }
 0x60c   : > { %s1912_s25 = scalar_lea.vmem %s2333_s26, 128  ;;  %s1918_s1 = scalar_lea.vmem %s1917_s18, 256 }
 0x60d   : > { %p1913_p11 = scmp.ne.s32.totalorder %s2333_s26, %s1912_s25  ;;  %p1919_p0 = scmp.lt.s32.totalorder %s2333_s26, %s1917_s18 }
 0x60e   : > { %p1920_p1 = scmp.lt.s32.totalorder %s1918_s1, %s1912_s25 }
 0x60f   : > { %p1914_p12 = pnand %p1913_p11, %p2091_p5 }
 0x610   : > { %p1921_p2 = por %p1920_p1, %p1919_p0 }
 0x611   : > { %p1915_p13 = pneg %p1914_p12 }
 0x613   : > { %p1922_p3 = pnand %p1921_p2, %p1915_p13 }
 0x674   : > { %v1209_v50 = vpop.permute.xlu0 %1208 }
 0x675   : > { %v1219_v52 = vsel %vm546_vm4, %v975_v36, %v1209_v50  ;;  %v1446_v36 = vld [vmem:[%s2384_s10 + $0x40] sm:$0xff] }
 0x676   : > { %v1825_v38 = vpack.c.bf16 %v1447_v37, %v1446_v36 }
 0x678   : > { %v1213_v51 = vpop.permute.xlu1 %1212  ;;  %1826 = vmatpush3.bf16.msra.mxu0 %v1825_v38 }
 0x679   : > { %v1221_v53 = vsel %vm1220_vm6, %v1219_v52, %v1213_v51  ;;  %1827 = vmatprep.subr.bf16.mxu0 %v1976_v10 }
 0x67c   : > { %v1217_v54 = vpop.permute.xlu0 %1216  ;;  %1829 = vmatpush3.bf16.msra.mxu0 %v1828_v41 }
 0x67d   : > { %v1223_v55 = vsel %vm1222_vm7, %v1221_v53, %v1217_v54  ;;  %1830 = vmatprep.subr.bf16.mxu0 %v1976_v10 }
 0x67e   : > { %1746 = vmatmul.mubr.msk.f32.vlgmr.msra.gmra.mrb[12].mxu1 %vm412_vm0, %v1223_v55 }
 0x67f   : > { %1756 = vmatprep.mubr.msk.f32.mxu1 %vm1977_vm1, %v1978_v13 }
 0x680   : > { %1832 = vmatpush3.bf16.msra.mxu0 %v1831_v44 }
 0x681   : > { %1833 = vmatprep.subr.bf16.mxu0 %v1976_v10 }
 0x684   : > { %1835 = vmatpush3.bf16.msra.mxu0 %v1834_v47 }
 0x751   : > { %v1304_v57 = vpop.f32.mrb[12].mxu1 }
 0x752   : > { %v1305_v58 = vadd.f32 %v1627_v56, %v1304_v57  ;;  %v1747_v59 = vpop.f32.mrb[13].mxu1 }
 0x754   : > { %v2238_v60 = vadd.f32 %v1305_v58, %v2106_v0  ;;  %v1347_v0 = vld [vmem:[%s2382_s8 + $0x8] sm:$0xff] }
 0x755   : > { %v1807_v5 = vpack.c.bf16 %v1347_v0, %v1346_v3 }
 0x756   : > { %v1311_v61 = vsel %vm412_vm0, %v2238_v60, 0.0 }
 0x757   : > { %1312 = vadd.xlane.f32.xlu1 %v1311_v61  ;;  %1808 = vmatpush3.bf16.msra.mxu1 %v1807_v5  ;;  %v1633_v61 = vld [vmem:[%s2385_s11] ss:$0 sm:$0xff] }
 0x758   : > { %1809 = vmatprep.subr.bf16.mxu1 %v1976_v10 }
 0x75b   : > { %1811 = vmatpush3.bf16.msra.mxu1 %v1810_v7 }
 0x7e4   : > { %v1313_v62 = vpop.xlane.xlu1 %1312 }
 0x7e5   : > { %v1314_v63 = vmul.f32 0.03125, %v1313_v62 }
 0x7e7   : > { %v1315_v1 = vsub.f32 %v2238_v60, %v1314_v63 }
 0x7e9   : > { %v1316_v2 = vmul.f32 %v1315_v1, %v1315_v1 }
 0x7eb   : > { %v1317_v13 = vsel %vm412_vm0, %v1316_v2, 0.0 }
 0x7ec   : > { %1318 = vadd.xlane.f32.xlu0 %v1317_v13 }
 0x879   : > { %v1319_v12 = vpop.xlane.xlu0 %1318 }
 0x87a   : > { %v1320_v14 = vmul.f32 0.032258064, %v1319_v12 }
 0x87c   : > { %1906 = vrsqrt.f32 %v1320_v14  ;;  %vm1323_vm8 = vcmp.eq.f32.partialorder %v1320_v14, inf  ;;  %v1326_v17 = vand.u32 2147483648, %v1320_v14  ;;  %vm1325_vm9 = vcmp.eq.f32.partialorder %v1320_v14, 0.0 }
 0x886   : > { %v1907_v15 = vpop.eup %1906 }
 0x887   : > { %v1322_v16 = vmul.f32 %v1907_v15, %v1320_v14 }
 0x889   : > { %v1324_v18 = vsel %vm1323_vm8, %v1320_v14, %v1322_v16 }
 0x88a   : > { %v1327_v19 = vsel %vm1325_vm9, %v1326_v17, %v1324_v18 }
 0x88b   : > { %v1328_v20 = vadd.f32 1e-05, %v1327_v19 }
 0x88d   : > { %1908 = vrcp.f32 %v1328_v20 }
 0x897   : > { %v1909_v21 = vpop.eup %1908 }
 0x898   : > { %v1330_v23 = vmul.f32 %v1909_v21, %v1315_v1 }
 0x89a   : > { %v1337_v25 = vmul.f32 %v1629_v22, %v1330_v23 }
 0x89c   : > { %v1344_v26 = vadd.f32 %v1630_v24, %v1337_v25 }
 0x89e   : > { %1757 = vmatmul.mubr.msk.f32.vlgmr.msra.gmra.mrb[14].mxu1 %vm412_vm0, %v1344_v26 }
 0x971   : > { %v1425_v49 = vpop.f32.mrb[14].mxu1 }
 0x972   : > { %v1426_v50 = vadd.f32 %v1631_v48, %v1425_v49  ;;  %v1758_v51 = vpop.f32.mrb[15].mxu1 }
 0x974   : > { %v1430_v52 = vmul.f32 %v1426_v50, %v1426_v50  ;;  %v1429_v58 = vmul.f32 0.5, %v1426_v50 }
 0x976   : > { %v1431_v53 = vmul.f32 %v1430_v52, %v1426_v50 }
 0x978   : > { %v1432_v54 = vmul.f32 0.044715, %v1431_v53 }
 0x97a   : > { %v1433_v55 = vadd.f32 %v1432_v54, %v1426_v50 }
 0x97c   : > { %v1434_v56 = vmul.f32 0.7978846, %v1433_v55 }
 0x97e   : > { %1910 = vtanh.f32 %v1434_v56 }
 0x988   : > { %v1911_v57 = vpop.eup %1910 }
 0x989   : > { %v1436_v59 = vadd.f32 1.0, %v1911_v57 }
 0x98b   : > { %v1437_v10 = vmul.f32 %v1436_v59, %v1429_v58 }
 0x98d   : > { %1792 = vmatmul.mubr.f32.vlgmr.msra.gmra.mrb[6].mxu0 %v1437_v10 }
 0xa60   : > { %v1527_v62 = vpop.f32.mrb[6].mxu0 }
 0xa61   : > { %v1528_v63 = vadd.f32 %v1633_v61, %v1527_v62  ;;  %v1793_v1 = vpop.f32.mrb[7].mxu0 }
 0xa63   : > { %v1531_v2 = vadd.f32 %v1528_v63, %v2238_v60 }
 0xa65   : > { %1532 = vst.msk [vmem:[%s404_s20] sm:$0xff] %vm412_vm0, %v1531_v2 }
 0xa66   : > { %1925 = shalt.err (!%p1922_p3)
}
 0xa67   : > { %s1926_s15 = scalar_lea.hbm %s2331_s0, 128  ;;  %s1930_s28 = scalar_lea.hbm %s2386_s12, 256 }
 0xa68   : > { %p1927_p4 = scmp.ne.s32.totalorder %s2331_s0, %s1926_s15  ;;  %p1931_p9 = scmp.lt.u32.totalorder %s2331_s0, %s2386_s12 }
 0xa69   : > { %p1932_p10 = scmp.lt.u32.totalorder %s1930_s28, %s1926_s15  ;;  %p1934_p12 = scmp.lt.u32.totalorder %s1926_s15, %s2331_s0 }
 0xa6a   : > { %p1928_p7 = pnand %p1927_p4, %p2091_p5 }
 0xa6b   : > { %p1933_p11 = por %p1932_p10, %p1931_p9 }
 0xa6c   : > { %p1929_p8 = pneg %p1928_p7 }
 0xa6d   : > { %p1935_p13 = por %p1934_p12, %p1933_p11 }
 0xa6f   : > { %p1936_p0 = pnand %p1935_p13, %p1929_p8 }
 0xa71   : > { %1939 = shalt.err (!%p1936_p0)
}
 0xa72   : > { %1836 = dma.vmem_to_hbm [thread:$0]  (%p2091_p5), %s2333_s26, 128, %s2331_s0, %s1534_s17  }
 0xa73 PF: > { %p1842_p1 = scmp.ge.s32.totalorder %s1974_s24, 2  ;;  %s1559_s1 = sand.u32 1, %s1962_s21  }
 0xa74   : > { %s1560_s25 = scalar_lea.sflag [#allocation3], %s1559_s1 }
 0xa75   : > { %p1839_p2 = pnand %p1842_p1, %p2095_p6 }
 0xa77   : > { %1957 = dma.done.wait (!%p1839_p2), %s1560_s25, 128  }
 0xa78   : > { %1959 = vsyncadd (!%p1839_p2), %s1560_s25, 4294967168  ;;  %p22_p3 = scmp.ge.s32.totalorder %s2078_s27, 4   ;;  %s2393_s21 = smov %s1966_s22 }
 0xa79   : > { %s2394_s22 = smov %s1970_s23  ;;  %s2395_s23 = smov %s2089_s30 }
 0xa7a   : > { %s2396_s24 = smov %s2078_s27  ;;  %24 = sbr.rel (!%p22_p3) target bundleno = 6 (0x6), region = 103 }
 0xa81   :  { %1565 = vsyncpa [#allocation3], 1 }
 0xa82   :  { %1567 = vsyncpa [#allocation3 + $0x1], 1 }

// kernel: tpu_custom_call.1
= control target key start
LH: loop header
LB: loop body
LE: loop exit
PB: predicated region body
PF: predicated region fallthrough
CT: control target
= control target key end

     0   :  { %s2374_s0 = inlined_call_operand.vmem [shape: f32[2,8,32], index: 0, kind: input, shape index: {}]   ;;  %s2375_s1 = inlined_call_operand.vmem [shape: f32[1,32], index: 1, kind: input, shape index: {}]   ;;  %s2376_s2 = inlined_call_operand.vmem [shape: f32[1,32], index: 2, kind: input, shape index: {}]   ;;  %s2377_s3 = inlined_call_operand.vmem [shape: f32[32,96], index: 3, kind: input, shape index: {}]   ;;  %s2378_s4 = inlined_call_operand.vmem [shape: f32[32,32], index: 4, kind: input, shape index: {}]   ;;  %s2379_s5 = inlined_call_operand.vmem [shape: f32[1,32], index: 5, kind: input, shape index: {}]   ;;  %s2380_s6 = inlined_call_operand.vmem [shape: f32[1,32], index: 6, kind: input, shape index: {}]   ;;  %s2381_s7 = inlined_call_operand.vmem [shape: f32[1,32], index: 7, kind: input, shape index: {}]   ;;  %s2382_s8 = inlined_call_operand.vmem [shape: f32[32,128], index: 8, kind: input, shape index: {}]   ;;  %s2383_s9 = inlined_call_operand.vmem [shape: f32[1,128], index: 9, kind: input, shape index: {}]   ;;  %s2384_s10 = inlined_call_operand.vmem [shape: f32[128,32], index: 10, kind: input, shape index: {}]   ;;  %s2385_s11 = inlined_call_operand.vmem [shape: f32[1,32], index: 11, kind: input, shape index: {}]   ;;  %s2386_s12 = inlined_call_operand.hbm [shape: f32[2,8,32], index: 12, kind: output, shape index: {}]  }
   0x1   :  { %2387 = sst [smem:[#allocation5_spill]] %s2374_s0 }
   0x2   :  { %2388 = sst [smem:[#allocation6_spill]] %s2375_s1 }
   0x3   :  { %17 = vsyncpa [#allocation3], 0 }
   0x4   :  { %19 = vsyncpa [#allocation3 + $0x1], 0  ;;  %s2053_s21 = smov 0   ;;  %s2055_s22 = smov 0  }
   0x5   :  { %s2057_s23 = smov 0   ;;  %s2059_s24 = smov 0  }
   0x6 LB: > { %s2074_s25 = sadd.s32 4294967295, %s1974_s24   ;;  %s1606_s26 = sadd.s32 4294967294, %s1974_s24   ;;  %s1974_s24 = sphi %s2059_s24, %s2396_s24   ;;  %s1970_s23 = sphi %s2057_s23, %s2395_s23   ;;  %s1966_s22 = sphi %s2055_s22, %s2394_s22   ;;  %s1962_s21 = sphi %s2053_s21, %s2393_s21  }
   0x7   : > { %s2078_s27 = sadd.s32 1, %s1974_s24   ;;  %s289_s28 = sadd.s32 1, %s1970_s23 }
   0x8   : > { %s286_s29 = ssub.s32 %s1974_s24, %s2078_s27  ;;  %p299_p0 = scmp.ne.s32.totalorder %s1970_s23, %s1966_s22 }
   0x9   : > { %p287_p1 = scmp.eq.s32.totalorder %s286_s29, 0  ;;  %p300_p2 = scmp.eq.s32.totalorder %s2074_s25, 1 }
   0xa   : > { %p305_p3 = scmp.ne.s32.totalorder %s1966_s22, %s1962_s21  ;;  %p306_p4 = scmp.eq.s32.totalorder %s1606_s26, 1 }
   0xb   : > { %s2089_s30 = scalar_select %p287_p1, %s1970_s23, %s289_s28  }
   0xc   : > { %p2091_p5 = por %p300_p2, %p299_p0  ;;  %p2095_p6 = por %p306_p4, %p305_p3 }
   0xd   : > { %p1609_p7 = scmp.ge.s32.totalorder %s1974_s24, 1  ;;  %p364_p8 = scmp.lt.s32.totalorder %s1974_s24, 3 }
   0xf   : > { %p365_p9 = pnand %p1609_p7, %p364_p8 }
  0x10   : > { %p405_p10 = scmp.lt.s32.totalorder (!%p365_p9), %s2074_s25, 1  ;;  %vm412_vm0 = vcmask (!%p365_p9), 261120   ;;  %s2391_s0 = sld [smem:[#allocation5_spill]] (!%p365_p9)  ;;  %v448_v7 = vld [vmem:[%s2377_s3] sm:$0xff] (!%p365_p9)  ;;  %v449_v8 = vld [vmem:[%s2377_s3 + $0x8] sm:$0xff] (!%p365_p9)  ;;  %v450_v9 = vld [vmem:[%s2377_s3 + $0x10] sm:$0xff] (!%p365_p9)  ;;  %v539_v42 = vlaneseq (!%p365_p9) }
  0x11   : > { %368 = sbr.rel (%p365_p9) target bundleno = 2675 (0xa73), region = 68  ;;  %v1976_v10 = vmov (!%p365_p9), 0.0|0.0   ;;  %v1795_v11 = vpack.c.bf16 (!%p365_p9), %v449_v8, %v448_v7  ;;  %v451_v12 = vld [vmem:[%s2377_s3 + $0x18] sm:$0xff] (!%p365_p9)  ;;  %vm1977_vm1 = vmmov (!%p365_p9), 0   ;;  %v1978_v13 = vmov (!%p365_p9), 0.0   ;;  %s2392_s1 = sld [smem:[#allocation6_spill]] (!%p365_p9) }
  0x12   : > { %1794 = vmatprep.subr.bf16.mxu1 (!%p365_p9), %v1976_v10  ;;  %1694 = vmatprep.mubr.msk.f32.mxu1 (!%p365_p9), %vm1977_vm1, %v1978_v13  ;;  %v1798_v14 = vpack.c.bf16 (!%p365_p9), %v451_v12, %v450_v9  ;;  %v1613_v26 = vld [vmem:[%s2376_s2] ss:$0 sm:$0xff] (!%p365_p9)  ;;  %vm546_vm4 = vcmask (!%p365_p9), 64512   ;;  %s1979_s29 = smov (!%p365_p9), 104   ;;  %s1982_s17 = smov (!%p365_p9), 96   ;;  %v540_v43 = vshrl.u32 (!%p365_p9), %v539_v42, 7 }
  0x13   : > { %1707 = vmatprep.subr.mxu0 (!%p365_p9), %v1978_v13  ;;  %1709 = vmatprep.mubr.msk.f32.mxu0 (!%p365_p9), %vm1977_vm1, %v1978_v13  ;;  %v542_v44 = vand.u32 (!%p365_p9), 127, %v539_v42  ;;  %s1983_s18 = smov (!%p365_p9), 64   ;;  %v1227_v42 = vld [vmem:[%s2378_s4 + $0x18] sm:$0xff] (!%p365_p9)  ;;  %s1986_s20 = smov (!%p365_p9), 24   ;;  %vm1220_vm6 = vcmask (!%p365_p9), 130048   ;;  %vm1222_vm7 = vcmask (!%p365_p9), 195584  }
  0x14   : > { %1796 = vmatpush3.bf16.msra.mxu1 (!%p365_p9), %v1795_v11 }
  0x15   : > { %1797 = vmatprep.subr.bf16.mxu1 (!%p365_p9), %v1976_v10  ;;  %vm543_vm5 = vcmp.gt.s32.totalorder (!%p365_p9), %v542_v44, %v540_v43 }
  0x17   : > { %v1612_v24 = vld [vmem:[%s2392_s1] ss:$0 sm:$0xff] (!%p365_p9) }
  0x18   : > { %s406_s15 = scalar_select %p405_p10, %s2074_s25, 1  ;;  %1799 = vmatpush3.bf16.msra.mxu1 %v1798_v14 }
  0x19   : > { %1697 = vmatprep.subr.mxu1 %v1978_v13 }
  0x1a   : > { %s1611_s16 = sshll.u32 %s406_s15, 3  ;;  %s1980_s15 = smov 120  }
  0x1b   : > { %s408_s19 = scalar_lea.vmem %s2391_s0, %s1611_s16  ;;  %s1981_s16 = smov 112  }
  0x1c   : > { %v2106_v0 = vld [vmem:[%s408_s19] sm:$0xff]  ;;  %s1985_s19 = smov 16  }
  0x1d   : > { %v413_v1 = vsel %vm412_vm0, %v2106_v0, 0.0 }
  0x1e   : > { %414 = vadd.xlane.f32.xlu0 %v413_v1 }
  0xab   : > { %v415_v2 = vpop.xlane.xlu0 %414 }
  0xac   : > { %v417_v3 = vmul.f32 0.03125, %v415_v2 }
  0xae   : > { %v418_v4 = vsub.f32 %v2106_v0, %v417_v3 }
  0xb0   : > { %v419_v5 = vmul.f32 %v418_v4, %v418_v4 }
  0xb2   : > { %v420_v6 = vsel %vm412_vm0, %v419_v5, 0.0 }
  0xb3   : > { %421 = vadd.xlane.f32.xlu0 %v420_v6 }
 0x140   : > { %v422_v15 = vpop.xlane.xlu0 %421 }
 0x141   : > { %v423_v16 = vmul.f32 0.032258064, %v422_v15 }
 0x143   : > { %1886 = vrsqrt.f32 %v423_v16  ;;  %vm426_vm2 = vcmp.eq.f32.partialorder %v423_v16, inf  ;;  %v429_v19 = vand.u32 2147483648, %v423_v16  ;;  %vm428_vm3 = vcmp.eq.f32.partialorder %v423_v16, 0.0 }
 0x14d   : > { %v1887_v17 = vpop.eup %1886 }
 0x14e   : > { %v425_v18 = vmul.f32 %v1887_v17, %v423_v16 }
 0x150   : > { %v427_v20 = vsel %vm426_vm2, %v423_v16, %v425_v18 }
 0x151   : > { %v430_v21 = vsel %vm428_vm3, %v429_v19, %v427_v20 }
 0x152   : > { %v431_v22 = vadd.f32 1e-05, %v430_v21 }
 0x154   : > { %1888 = vrcp.f32 %v431_v22 }
 0x15e   : > { %v1889_v23 = vpop.eup %1888 }
 0x15f   : > { %v433_v25 = vmul.f32 %v1889_v23, %v418_v4 }
 0x161   : > { %v440_v27 = vmul.f32 %v1612_v24, %v433_v25 }
 0x163   : > { %v447_v28 = vadd.f32 %v1613_v26, %v440_v27 }
 0x165   : > { %1695 = vmatmul.mubr.msk.f32.vlgmr.msra.gmra.mrb[0].mxu1 %vm412_vm0, %v447_v28 }
 0x166   : > { %1699 = vmatprep.mubr.msk.f32.mxu1 %vm1977_vm1, %v1978_v13 }
 0x238   : > { %v2141_v29 = vpop.f32.mrb[0].mxu1 }
 0x239   : > { %v535_v30 = vmul.f32 0.35355338, %v2141_v29  ;;  %532 = vrot.lane.b32.xlu0 %v2141_v29, %s1979_s29  ;;  %526 = vrot.lane.b32.xlu1 %v2141_v29, %s1980_s15  ;;  %v1696_v31 = vpop.f32.mrb[1].mxu1  ;;  %s402_s15 = sand.u32 1, %s1966_s22  }
 0x23b   : > { %1698 = vmatpush3.xpose.msk.msra.mxu1 %vm546_vm4, %v535_v30 }
 0x23c   : > { %1702 = vmatprep.subr.mxu1 %v1978_v13 }
 0x23d   : > { %529 = vrot.lane.b32.xlu1 %v2141_v29, %s1981_s16  ;;  %s1610_s16 = sshll.u32 %s402_s15, 3 }
 0x241   : > { %544 = vrot.lane.b32.xlu1 %v2141_v29, %s1982_s17 }
 0x2ab   : > { %v2150_v32 = vpop.permute.xlu1 %526  ;;  %v2158_v35 = vpop.permute.xlu0 %532 }
 0x2ac   : > { %622 = vrot.lane.b32.xlu1 %v2150_v32, %s1982_s17  ;;  %v536_v36 = vmul.f32 0.35355338, %v2150_v32  ;;  %v538_v38 = vmul.f32 0.35355338, %v2158_v35 }
 0x2af   : > { %v2153_v33 = vpop.permute.xlu1 %529 }
 0x2b0   : > { %v537_v34 = vmul.f32 0.35355338, %v2153_v33  ;;  %699 = vrot.lane.b32.xlu1 %v2153_v33, %s1982_s17 }
 0x2b2   : > { %1708 = vmatpush3.xpose.msk.msra.mxu0 %vm546_vm4, %v537_v34 }
 0x2b3   : > { %v545_v37 = vpop.permute.xlu1 %544  ;;  %1717 = vmatprep.subr.mxu0 %v1978_v13 }
 0x2b4   : > { %776 = vrot.lane.b32.xlu1 %v2158_v35, %s1982_s17  ;;  %1700 = vmatmul.mubr.msk.f32.vlgmr.msra.gmra.mrb[2].mxu1 %vm546_vm4, %v545_v37  ;;  %s1534_s17 = scalar_lea.sflag [#allocation3], %s402_s15 }
 0x2b5   : > { %1703 = vmatpush3.xpose.msk.msra.mxu1 %vm546_vm4, %v536_v36  ;;  %1704 = vmatprep.mubr.msk.f32.mxu1 %vm1977_vm1, %v1978_v13 }
 0x2b6   : > { %1712 = vmatprep.subr.mxu1 %v1978_v13 }
 0x31e   : > { %v623_v39 = vpop.permute.xlu1 %622 }
 0x31f   : > { %1705 = vmatmul.mubr.msk.f32.vlgmr.msra.gmra.mrb[4].mxu1 %vm546_vm4, %v623_v39  ;;  %v1225_v39 = vld [vmem:[%s2378_s4 + $0x8] sm:$0xff] }
 0x320   : > { %1713 = vmatpush3.xpose.msk.msra.mxu1 %vm546_vm4, %v538_v38  ;;  %1714 = vmatprep.mubr.msk.f32.mxu1 %vm1977_vm1, %v1978_v13  ;;  %v1224_v38 = vld [vmem:[%s2378_s4] sm:$0xff] }
 0x321   : > { %1722 = vmatprep.subr.mxu1 %v1978_v13 }
 0x322   : > { %v700_v40 = vpop.permute.xlu1 %699 }
 0x323   : > { %1710 = vmatmul.mubr.msk.f32.vlgmr.msra.gmra.mrb[0].mxu0 %vm546_vm4, %v700_v40  ;;  %v1801_v40 = vpack.c.bf16 %v1225_v39, %v1224_v38  ;;  %v1448_v39 = vld [vmem:[%s2384_s10 + $0x50] sm:$0xff] }
 0x324   : > { %1719 = vmatprep.mubr.msk.f32.mxu0 %vm1977_vm1, %v1978_v13 }
 0x326   : > { %v777_v41 = vpop.permute.xlu1 %776 }
 0x327   : > { %1715 = vmatmul.mubr.msk.f32.vlgmr.msra.gmra.mrb[6].mxu1 %vm546_vm4, %v777_v41  ;;  %v1226_v41 = vld [vmem:[%s2378_s4 + $0x10] sm:$0xff] }
 0x328   : > { %1724 = vmatprep.mubr.msk.f32.mxu1 %vm1977_vm1, %v1978_v13  ;;  %v1804_v43 = vpack.c.bf16 %v1227_v42, %v1226_v41  ;;  %v1450_v42 = vld [vmem:[%s2384_s10 + $0x60] sm:$0xff] }
 0x387   : > { %v618_v45 = vpop.f32.mrb[2].mxu1 }
 0x388   : > { %v855_v46 = vsel %vm543_vm5, -inf, %v618_v45  ;;  %v1701_v47 = vpop.f32.mrb[3].mxu1 }
 0x389   : > { %v859_v48 = vsel %vm546_vm4, %v855_v46, -inf }
 0x38a   : > { %860 = vmax.xlane.f32.xlu1 %v859_v48 }
 0x3f2   : > { %v695_v49 = vpop.f32.mrb[4].mxu1 }
 0x3f3   : > { %v856_v50 = vsel %vm543_vm5, -inf, %v695_v49  ;;  %v1706_v51 = vpop.f32.mrb[5].mxu1 }
 0x3f4   : > { %v862_v52 = vsel %vm546_vm4, %v856_v50, -inf }
 0x3f5   : > { %863 = vmax.xlane.f32.xlu0 %v862_v52 }
 0x3f6   : > { %v772_v53 = vpop.f32.mrb[0].mxu0 }
 0x3f7   : > { %v857_v54 = vsel %vm543_vm5, -inf, %v772_v53  ;;  %v1711_v55 = vpop.f32.mrb[1].mxu0 }
 0x3f8   : > { %v865_v56 = vsel %vm546_vm4, %v857_v54, -inf }
 0x3f9   : > { %866 = vmax.xlane.f32.xlu1 %v865_v56  ;;  %v1627_v56 = vld [vmem:[%s2379_s5] ss:$0 sm:$0xff] }
 0x3fa   : > { %v849_v57 = vpop.f32.mrb[6].mxu1 }
 0x3fb   : > { %v858_v58 = vsel %vm543_vm5, -inf, %v849_v57  ;;  %v1716_v59 = vpop.f32.mrb[7].mxu1 }
 0x3fc   : > { %v868_v60 = vsel %vm546_vm4, %v858_v58, -inf }
 0x3fd   : > { %869 = vmax.xlane.f32.xlu0 %v868_v60 }
 0x40a   : > { %903 = vrot.lane.b32.xlu1 %v2141_v29, %s1983_s18 }
 0x417   : > { %v861_v61 = vpop.xlane.xlu1 %860 }
 0x418   : > { %v871_v62 = vsub.f32 %v855_v46, %v861_v61 }
 0x41a   : > { %v875_v63 = vmul.f32 1.442695, %v871_v62 }
 0x41c   : > { %1890 = vpow2.f32 %v875_v63 }
 0x426   : > { %v1891_v1 = vpop.eup %1890 }
 0x427   : > { %v883_v2 = vsel %vm546_vm4, %v1891_v1, 0.0 }
 0x42e   : > { %884 = vadd.xlane.f32.xlu1 %v883_v2 }
 0x482   : > { %v864_v3 = vpop.xlane.xlu0 %863 }
 0x483   : > { %v872_v4 = vsub.f32 %v856_v50, %v864_v3  ;;  %v1346_v3 = vld [vmem:[%s2382_s8] sm:$0xff] }
 0x485   : > { %v877_v5 = vmul.f32 1.442695, %v872_v4  ;;  %v1348_v4 = vld [vmem:[%s2382_s8 + $0x10] sm:$0xff] }
 0x486   : > { %v867_v6 = vpop.xlane.xlu1 %866 }
 0x487   : > { %1892 = vpow2.f32 %v877_v5  ;;  %v873_v7 = vsub.f32 %v857_v54, %v867_v6  ;;  %v1349_v6 = vld [vmem:[%s2382_s8 + $0x18] sm:$0xff] }
 0x489   : > { %v879_v8 = vmul.f32 1.442695, %v873_v7  ;;  %v1810_v7 = vpack.c.bf16 %v1349_v6, %v1348_v4 }
 0x48a   : > { %v904_v9 = vpop.permute.xlu1 %903  ;;  %v870_v11 = vpop.xlane.xlu0 %869 }
 0x48b   : > { %1894 = vpow2.f32 %v879_v8  ;;  %v874_v12 = vsub.f32 %v858_v58, %v870_v11  ;;  %1718 = vmatpush3.msra.mxu0 %v904_v9  ;;  %v1438_v8 = vld [vmem:[%s2384_s10] sm:$0xff]  ;;  %v1439_v9 = vld [vmem:[%s2384_s10 + $0x8] sm:$0xff] }
 0x48c   : > { %1727 = vmatprep.subr.mxu0 %v1978_v13  ;;  %v1813_v11 = vpack.c.bf16 %v1439_v9, %v1438_v8 }
 0x48d   : > { %v881_v14 = vmul.f32 1.442695, %v874_v12 }
 0x48f   : > { %1896 = vpow2.f32 %v881_v14 }
 0x491   : > { %v1893_v15 = vpop.eup %1892 }
 0x492   : > { %v886_v16 = vsel %vm546_vm4, %v1893_v15, 0.0 }
 0x493   : > { %887 = vadd.xlane.f32.xlu0 %v886_v16 }
 0x495   : > { %v1895_v17 = vpop.eup %1894 }
 0x496   : > { %v889_v18 = vsel %vm546_vm4, %v1895_v17, 0.0 }
 0x497   : > { %890 = vadd.xlane.f32.xlu1 %v889_v18 }
 0x499   : > { %v1897_v19 = vpop.eup %1896 }
 0x49a   : > { %v892_v20 = vsel %vm546_vm4, %v1897_v19, 0.0 }
 0x49b   : > { %893 = vadd.xlane.f32.xlu0 %v892_v20 }
 0x4a8   : > { %1055 = vrot.lane.b32.xlu1 %v2153_v33, %s1983_s18 }
 0x4ac   : > { %1131 = vrot.lane.b32.xlu1 %v2158_v35, %s1983_s18 }
 0x4b1   : > { %979 = vrot.lane.b32.xlu0 %v2150_v32, %s1983_s18  ;;  %s1984_s18 = smov 8  }
 0x4bb   : > { %v885_v21 = vpop.xlane.xlu1 %884 }
 0x4bc   : > { %1898 = vrcp.f32 %v885_v21 }
 0x4c6   : > { %v1899_v22 = vpop.eup %1898 }
 0x4c7   : > { %v899_v23 = vmul.f32 %v1899_v22, %v1891_v1  ;;  %v1629_v22 = vld [vmem:[%s2380_s6] ss:$0 sm:$0xff] }
 0x4c9   : > { %1720 = vmatmul.mubr.msk.f32.vlgmr.msra.gmra.mrb[2].mxu0 %vm546_vm4, %v899_v23 }
 0x4ca   : > { %1729 = vmatprep.mubr.msk.f32.mxu0 %vm1977_vm1, %v1978_v13 }
 0x520   : > { %v888_v24 = vpop.xlane.xlu0 %887 }
 0x521   : > { %1900 = vrcp.f32 %v888_v24  ;;  %v1630_v24 = vld [vmem:[%s2381_s7] ss:$0 sm:$0xff] }
 0x524   : > { %v891_v25 = vpop.xlane.xlu1 %890 }
 0x525   : > { %1902 = vrcp.f32 %v891_v25 }
 0x528   : > { %v1056_v26 = vpop.permute.xlu1 %1055  ;;  %v894_v27 = vpop.xlane.xlu0 %893 }
 0x529   : > { %1904 = vrcp.f32 %v894_v27  ;;  %1728 = vmatpush3.msra.mxu0 %v1056_v26  ;;  %v1440_v27 = vld [vmem:[%s2384_s10 + $0x10] sm:$0xff] }
 0x52a   : > { %1812 = vmatprep.subr.bf16.mxu0 %v1976_v10 }
 0x52b   : > { %v1901_v28 = vpop.eup %1900 }
 0x52c   : > { %v900_v29 = vmul.f32 %v1901_v28, %v1893_v15  ;;  %v980_v30 = vpop.permute.xlu0 %979  ;;  %v1132_v31 = vpop.permute.xlu1 %1131  ;;  %v1441_v28 = vld [vmem:[%s2384_s10 + $0x18] sm:$0xff] }
 0x52d   : > { %1723 = vmatpush3.msra.mxu1 %v980_v30  ;;  %v1442_v30 = vld [vmem:[%s2384_s10 + $0x20] sm:$0xff] }
 0x52e   : > { %1725 = vmatmul.mubr.msk.f32.vlgmr.msra.gmra.mrb[8].mxu1 %vm546_vm4, %v900_v29  ;;  %1732 = vmatprep.subr.mxu1 %v1978_v13  ;;  %v1816_v29 = vpack.c.bf16 %v1441_v28, %v1440_v27 }
 0x52f   : > { %v1903_v32 = vpop.eup %1902  ;;  %1733 = vmatpush3.msra.mxu1 %v1132_v31  ;;  %1734 = vmatprep.mubr.msk.f32.mxu1 %vm1977_vm1, %v1978_v13  ;;  %v1443_v31 = vld [vmem:[%s2384_s10 + $0x28] sm:$0xff] }
 0x530   : > { %v901_v33 = vmul.f32 %v1903_v32, %v1895_v17  ;;  %1800 = vmatprep.subr.bf16.mxu1 %v1976_v10  ;;  %v1819_v32 = vpack.c.bf16 %v1443_v31, %v1442_v30 }
 0x532   : > { %1730 = vmatmul.mubr.msk.f32.vlgmr.msra.gmra.mrb[4].mxu0 %vm546_vm4, %v901_v33  ;;  %v1444_v33 = vld [vmem:[%s2384_s10 + $0x30] sm:$0xff] }
 0x533   : > { %v1905_v34 = vpop.eup %1904  ;;  %1791 = vmatprep.mubr.msk.f32.mxu0 %vm1977_vm1, %v1978_v13  ;;  %1814 = vmatpush3.bf16.msra.mxu0 %v1813_v11 }
 0x534   : > { %v902_v35 = vmul.f32 %v1905_v34, %v1897_v19  ;;  %1815 = vmatprep.subr.bf16.mxu0 %v1976_v10  ;;  %v1445_v34 = vld [vmem:[%s2384_s10 + $0x38] sm:$0xff] }
 0x536   : > { %1735 = vmatmul.mubr.msk.f32.vlgmr.msra.gmra.mrb[10].mxu1 %vm546_vm4, %v902_v35  ;;  %v1822_v35 = vpack.c.bf16 %v1445_v34, %v1444_v33 }
 0x537   : > { %1745 = vmatprep.mubr.msk.f32.mxu1 %vm1977_vm1, %v1978_v13  ;;  %1802 = vmatpush3.bf16.msra.mxu1 %v1801_v40  ;;  %v1449_v40 = vld [vmem:[%s2384_s10 + $0x58] sm:$0xff] }
 0x538   : > { %1803 = vmatprep.subr.bf16.mxu1 %v1976_v10  ;;  %1817 = vmatpush3.bf16.msra.mxu0 %v1816_v29  ;;  %v1828_v41 = vpack.c.bf16 %v1449_v40, %v1448_v39 }
 0x539   : > { %1818 = vmatprep.subr.bf16.mxu0 %v1976_v10 }
 0x53b   : > { %1805 = vmatpush3.bf16.msra.mxu1 %v1804_v43  ;;  %v1451_v43 = vld [vmem:[%s2384_s10 + $0x68] sm:$0xff] }
 0x53c   : > { %1806 = vmatprep.subr.bf16.mxu1 %v1976_v10  ;;  %1820 = vmatpush3.bf16.msra.mxu0 %v1819_v32 }
 0x53d   : > { %1821 = vmatprep.subr.bf16.mxu0 %v1976_v10 }
 0x540   : > { %1823 = vmatpush3.bf16.msra.mxu0 %v1822_v35 }
 0x541   : > { %1824 = vmatprep.subr.bf16.mxu0 %v1976_v10 }
 0x59c   : > { %v975_v36 = vpop.f32.mrb[2].mxu0 }
 0x59d   : > { %v1721_v37 = vpop.f32.mrb[3].mxu0 }
 0x59e   : > { %v1447_v37 = vld [vmem:[%s2384_s10 + $0x48] sm:$0xff] }
 0x601   : > { %v1051_v44 = vpop.f32.mrb[8].mxu1 }
 0x602   : > { %1208 = vrot.lane.b32.xlu0 %v1051_v44, %s1984_s18  ;;  %v1726_v45 = vpop.f32.mrb[9].mxu1  ;;  %v1831_v44 = vpack.c.bf16 %v1451_v43, %v1450_v42 }
 0x603   : > { %v1452_v45 = vld [vmem:[%s2384_s10 + $0x70] sm:$0xff] }
 0x605   : > { %v1127_v46 = vpop.f32.mrb[4].mxu0 }
 0x606   : > { %1212 = vrot.lane.b32.xlu1 %v1127_v46, %s1985_s19  ;;  %v1731_v47 = vpop.f32.mrb[5].mxu0  ;;  %v1453_v46 = vld [vmem:[%s2384_s10 + $0x78] sm:$0xff]  ;;  %s1635_s19 = sshll.u32 %s2074_s25, 7 }
 0x607   : > { %v1834_v47 = vpack.c.bf16 %v1453_v46, %v1452_v45  ;;  %s2331_s0 = scalar_lea.hbm %s2386_s12, %s1635_s19 }
 0x609   : > { %v1203_v48 = vpop.f32.mrb[10].mxu1 }
 0x60a   : > { %1216 = vrot.lane.b32.xlu0 %v1203_v48, %s1986_s20  ;;  %v1736_v49 = vpop.f32.mrb[11].mxu1  ;;  %v1631_v48 = vld [vmem:[%s2383_s9] ss:$0 sm:$0xff]  ;;  %s404_s20 = scalar_lea.vmem [#allocation2], %s1610_s16  ;;  %s1987_s16 = smov [#allocation2]  }
 0x60b   : > { %s1547_s26 = sshll.u32 %s404_s20, 4  ;;  %s1916_s18 = sshll.u32 %s1987_s16, 4  ;;  %s2333_s26 = int_to_ptr.vmem [resolvable:$true] %s1547_s26  ;;  %s1917_s18 = int_to_ptr.vmem [resolvable:$false] %s1916_s18 }
 0x60c   : > { %s1912_s25 = scalar_lea.vmem %s2333_s26, 128  ;;  %s1918_s1 = scalar_lea.vmem %s1917_s18, 256 }
 0x60d   : > { %p1913_p11 = scmp.ne.s32.totalorder %s2333_s26, %s1912_s25  ;;  %p1919_p0 = scmp.lt.s32.totalorder %s2333_s26, %s1917_s18 }
 0x60e   : > { %p1920_p1 = scmp.lt.s32.totalorder %s1918_s1, %s1912_s25 }
 0x60f   : > { %p1914_p12 = pnand %p1913_p11, %p2091_p5 }
 0x610   : > { %p1921_p2 = por %p1920_p1, %p1919_p0 }
 0x611   : > { %p1915_p13 = pneg %p1914_p12 }
 0x613   : > { %p1922_p3 = pnand %p1921_p2, %p1915_p13 }
 0x674   : > { %v1209_v50 = vpop.permute.xlu0 %1208 }
 0x675   : > { %v1219_v52 = vsel %vm546_vm4, %v975_v36, %v1209_v50  ;;  %v1446_v36 = vld [vmem:[%s2384_s10 + $0x40] sm:$0xff] }
 0x676   : > { %v1825_v38 = vpack.c.bf16 %v1447_v37, %v1446_v36 }
 0x678   : > { %v1213_v51 = vpop.permute.xlu1 %1212  ;;  %1826 = vmatpush3.bf16.msra.mxu0 %v1825_v38 }
 0x679   : > { %v1221_v53 = vsel %vm1220_vm6, %v1219_v52, %v1213_v51  ;;  %1827 = vmatprep.subr.bf16.mxu0 %v1976_v10 }
 0x67c   : > { %v1217_v54 = vpop.permute.xlu0 %1216  ;;  %1829 = vmatpush3.bf16.msra.mxu0 %v1828_v41 }
 0x67d   : > { %v1223_v55 = vsel %vm1222_vm7, %v1221_v53, %v1217_v54  ;;  %1830 = vmatprep.subr.bf16.mxu0 %v1976_v10 }
 0x67e   : > { %1746 = vmatmul.mubr.msk.f32.vlgmr.msra.gmra.mrb[12].mxu1 %vm412_vm0, %v1223_v55 }
 0x67f   : > { %1756 = vmatprep.mubr.msk.f32.mxu1 %vm1977_vm1, %v1978_v13 }
 0x680   : > { %1832 = vmatpush3.bf16.msra.mxu0 %v1831_v44 }
 0x681   : > { %1833 = vmatprep.subr.bf16.mxu0 %v1976_v10 }
 0x684   : > { %1835 = vmatpush3.bf16.msra.mxu0 %v1834_v47 }
 0x751   : > { %v1304_v57 = vpop.f32.mrb[12].mxu1 }
 0x752   : > { %v1305_v58 = vadd.f32 %v1627_v56, %v1304_v57  ;;  %v1747_v59 = vpop.f32.mrb[13].mxu1 }
 0x754   : > { %v2238_v60 = vadd.f32 %v1305_v58, %v2106_v0  ;;  %v1347_v0 = vld [vmem:[%s2382_s8 + $0x8] sm:$0xff] }
 0x755   : > { %v1807_v5 = vpack.c.bf16 %v1347_v0, %v1346_v3 }
 0x756   : > { %v1311_v61 = vsel %vm412_vm0, %v2238_v60, 0.0 }
 0x757   : > { %1312 = vadd.xlane.f32.xlu1 %v1311_v61  ;;  %1808 = vmatpush3.bf16.msra.mxu1 %v1807_v5  ;;  %v1633_v61 = vld [vmem:[%s2385_s11] ss:$0 sm:$0xff] }
 0x758   : > { %1809 = vmatprep.subr.bf16.mxu1 %v1976_v10 }
 0x75b   : > { %1811 = vmatpush3.bf16.msra.mxu1 %v1810_v7 }
 0x7e4   : > { %v1313_v62 = vpop.xlane.xlu1 %1312 }
 0x7e5   : > { %v1314_v63 = vmul.f32 0.03125, %v1313_v62 }
 0x7e7   : > { %v1315_v1 = vsub.f32 %v2238_v60, %v1314_v63 }
 0x7e9   : > { %v1316_v2 = vmul.f32 %v1315_v1, %v1315_v1 }
 0x7eb   : > { %v1317_v13 = vsel %vm412_vm0, %v1316_v2, 0.0 }
 0x7ec   : > { %1318 = vadd.xlane.f32.xlu0 %v1317_v13 }
 0x879   : > { %v1319_v12 = vpop.xlane.xlu0 %1318 }
 0x87a   : > { %v1320_v14 = vmul.f32 0.032258064, %v1319_v12 }
 0x87c   : > { %1906 = vrsqrt.f32 %v1320_v14  ;;  %vm1323_vm8 = vcmp.eq.f32.partialorder %v1320_v14, inf  ;;  %v1326_v17 = vand.u32 2147483648, %v1320_v14  ;;  %vm1325_vm9 = vcmp.eq.f32.partialorder %v1320_v14, 0.0 }
 0x886   : > { %v1907_v15 = vpop.eup %1906 }
 0x887   : > { %v1322_v16 = vmul.f32 %v1907_v15, %v1320_v14 }
 0x889   : > { %v1324_v18 = vsel %vm1323_vm8, %v1320_v14, %v1322_v16 }
 0x88a   : > { %v1327_v19 = vsel %vm1325_vm9, %v1326_v17, %v1324_v18 }
 0x88b   : > { %v1328_v20 = vadd.f32 1e-05, %v1327_v19 }
 0x88d   : > { %1908 = vrcp.f32 %v1328_v20 }
 0x897   : > { %v1909_v21 = vpop.eup %1908 }
 0x898   : > { %v1330_v23 = vmul.f32 %v1909_v21, %v1315_v1 }
 0x89a   : > { %v1337_v25 = vmul.f32 %v1629_v22, %v1330_v23 }
 0x89c   : > { %v1344_v26 = vadd.f32 %v1630_v24, %v1337_v25 }
 0x89e   : > { %1757 = vmatmul.mubr.msk.f32.vlgmr.msra.gmra.mrb[14].mxu1 %vm412_vm0, %v1344_v26 }
 0x971   : > { %v1425_v49 = vpop.f32.mrb[14].mxu1 }
 0x972   : > { %v1426_v50 = vadd.f32 %v1631_v48, %v1425_v49  ;;  %v1758_v51 = vpop.f32.mrb[15].mxu1 }
 0x974   : > { %v1430_v52 = vmul.f32 %v1426_v50, %v1426_v50  ;;  %v1429_v58 = vmul.f32 0.5, %v1426_v50 }
 0x976   : > { %v1431_v53 = vmul.f32 %v1430_v52, %v1426_v50 }
 0x978   : > { %v1432_v54 = vmul.f32 0.044715, %v1431_v53 }
 0x97a   : > { %v1433_v55 = vadd.f32 %v1432_v54, %v1426_v50 }
 0x97c   : > { %v1434_v56 = vmul.f32 0.7978846, %v1433_v55 }
 0x97e   : > { %1910 = vtanh.f32 %v1434_v56 }
 0x988   : > { %v1911_v57 = vpop.eup %1910 }
 0x989   : > { %v1436_v59 = vadd.f32 1.0, %v1911_v57 }
 0x98b   : > { %v1437_v10 = vmul.f32 %v1436_v59, %v1429_v58 }
 0x98d   : > { %1792 = vmatmul.mubr.f32.vlgmr.msra.gmra.mrb[6].mxu0 %v1437_v10 }
 0xa60   : > { %v1527_v62 = vpop.f32.mrb[6].mxu0 }
 0xa61   : > { %v1528_v63 = vadd.f32 %v1633_v61, %v1527_v62  ;;  %v1793_v1 = vpop.f32.mrb[7].mxu0 }
 0xa63   : > { %v1531_v2 = vadd.f32 %v1528_v63, %v2238_v60 }
 0xa65   : > { %1532 = vst.msk [vmem:[%s404_s20] sm:$0xff] %vm412_vm0, %v1531_v2 }
 0xa66   : > { %1925 = shalt.err (!%p1922_p3)
}
 0xa67   : > { %s1926_s15 = scalar_lea.hbm %s2331_s0, 128  ;;  %s1930_s28 = scalar_lea.hbm %s2386_s12, 256 }
 0xa68   : > { %p1927_p4 = scmp.ne.s32.totalorder %s2331_s0, %s1926_s15  ;;  %p1931_p9 = scmp.lt.u32.totalorder %s2331_s0, %s2386_s12 }
 0xa69   : > { %p1932_p10 = scmp.lt.u32.totalorder %s1930_s28, %s1926_s15  ;;  %p1934_p12 = scmp.lt.u32.totalorder %s1926_s15, %s2331_s0 }
 0xa6a   : > { %p1928_p7 = pnand %p1927_p4, %p2091_p5 }
 0xa6b   : > { %p1933_p11 = por %p1932_p10, %p1931_p9 }
 0xa6c   : > { %p1929_p8 = pneg %p1928_p7 }
 0xa6d   : > { %p1935_p13 = por %p1934_p12, %p1933_p11 }
 0xa6f   : > { %p1936_p0 = pnand %p1935_p13, %p1929_p8 }
 0xa71   : > { %1939 = shalt.err (!%p1936_p0)
}
 0xa72   : > { %1836 = dma.vmem_to_hbm [thread:$0]  (%p2091_p5), %s2333_s26, 128, %s2331_s0, %s1534_s17  }
 0xa73 PF: > { %p1842_p1 = scmp.ge.s32.totalorder %s1974_s24, 2  ;;  %s1559_s1 = sand.u32 1, %s1962_s21  }
 0xa74   : > { %s1560_s25 = scalar_lea.sflag [#allocation3], %s1559_s1 }
 0xa75   : > { %p1839_p2 = pnand %p1842_p1, %p2095_p6 }
 0xa77   : > { %1957 = dma.done.wait (!%p1839_p2), %s1560_s25, 128  }
 0xa78   : > { %1959 = vsyncadd (!%p1839_p2), %s1560_s25, 4294967168  ;;  %p22_p3 = scmp.ge.s32.totalorder %s2078_s27, 4   ;;  %s2393_s21 = smov %s1966_s22 }
 0xa79   : > { %s2394_s22 = smov %s1970_s23  ;;  %s2395_s23 = smov %s2089_s30 }
 0xa7a   : > { %s2396_s24 = smov %s2078_s27  ;;  %24 = sbr.rel (!%p22_p3) target bundleno = 6 (0x6), region = 103 }
 0xa81   :  { %1565 = vsyncpa [#allocation3], 1 }
 0xa82   :  { %1567 = vsyncpa [#allocation3 + $0x1], 1 }

</bundles_post_ra>
